<compile_context>
chip_gen: v7x
topology: tpu7x:2x2x1
jax: 0.10.0
libtpu: 0.0.40
codegen_flags: <defaults>
</compile_context>

<pallas_src>
import functools

import jax
import jax.numpy as jnp
from jax.experimental import pallas as pl
from jax.experimental.pallas import tpu as pltpu

FEATURES_DIM = 1280  # EfficientNet-B0 feature dim

# TODO(synk): the EfficientNet-B0 convolutional trunks (feature_extractor_top /
# feature_extractor_side up to the last 1x1 conv) are not translated; the kernel
# consumes their final [B, H, W, 1280] feature maps and implements avgpool+flatten
# (the backbone head) plus the TwoInToolsOut-specific compute.


def _two_in_tools_out_kernel(seed_ref,                     # (1,) int32 in SMEM
                             top_ref, side_ref,            # [TB, TS, 1280] feature tiles
                             w_ref, b_ref,                 # fused head params
                             out_ref, xcat_ref,            # outputs (resident across s)
                             top_acc, side_acc,            # [TB, 1280] f32 VMEM scratch
                             *, inv_spatial, dropout_p, train):
    s = pl.program_id(1)

    @pl.when(s == 0)
    def _init():
        top_acc[...] = jnp.zeros_like(top_acc)
        side_acc[...] = jnp.zeros_like(side_acc)

    # Per-tile spatial partial sums, accumulated in f32 (cast-on-load handles bf16 input).
    top_acc[...] += jnp.sum(top_ref[...].astype(jnp.float32), axis=1)
    side_acc[...] += jnp.sum(side_ref[...].astype(jnp.float32), axis=1)

    @pl.when(s == pl.num_programs(1) - 1)
    def _finalize():
        inv = jnp.float32(inv_spatial)
        # avgpool + flatten + torch.cat((top_x, side_x), dim=1)
        x = jnp.concatenate([top_acc[...] * inv, side_acc[...] * inv], axis=1)  # [TB, 2560]

        # nn.Dropout(p): identity in eval mode; inverted dropout in train mode.
        if train and dropout_p > 0.0:
            pltpu.prng_seed(seed_ref[0] + pl.program_id(0))
            bits = pltpu.bitcast(pltpu.prng_random_bits(x.shape), jnp.uint32)
            u = (bits >> jnp.uint32(8)).astype(jnp.float32) * jnp.float32(1.0 / (1 << 24))
            keep = u >= jnp.float32(dropout_p)
            x = jnp.where(keep, x * jnp.float32(1.0 / (1.0 - dropout_p)),
                          jnp.zeros_like(x))

        xcat_ref[...] = x.astype(xcat_ref.dtype)

        # Fused heads: [x @ Wr^T | x @ Wl^T] + [br | bl] in one MXU pass.
        out_ref[...] = (jnp.dot(x, w_ref[...], preferred_element_type=jnp.float32)
                        + b_ref[...]).astype(out_ref.dtype)


def _pick_tile(total, preferred, align):
    """Largest t <= preferred that divides `total` and is sublane-aligned (or full)."""
    t = min(total, preferred)
    while t > 1:
        if total % t == 0 and (t % align == 0 or t == total):
            return t
        t -= 1
    return total


def two_in_tools_out(top_fm, side_fm, w_right_t, b_right, w_left_t, b_left,
                     *, dropout_p=0.3, train=False, seed=0,
                     batch_tile=8, spatial_tile=512):
    """top_fm/side_fm: [B,H,W,1280] (f32 or bf16); w_*_t: [2560,C]; b_*: [1,C].
    Returns (out_right, out_left, x) like the PyTorch module."""
    B, H, W, C = top_fm.shape
    assert C == FEATURES_DIM
    S = H * W
    num_classes = w_right_t.shape[1]
    f2 = 2 * FEATURES_DIM
    nc2 = 2 * num_classes

    # Flatten spatial dims so the reduction is a single tiled grid axis.
    top3 = top_fm.reshape(B, S, C)
    side3 = side_fm.reshape(B, S, C)

    # Fuse the two skinny heads into one lane-denser matmul.
    # Column order: [:num_classes] -> right head, [num_classes:] -> left head.
    w_cat = jnp.concatenate([w_right_t, w_left_t], axis=1)   # [2560, 2C]
    b_cat = jnp.concatenate([b_right, b_left], axis=1)       # [1, 2C]

    TB = _pick_tile(B, batch_tile, 8)
    TS = _pick_tile(S, spatial_tile, 8)
    nb, ns = B // TB, S // TS

    seed_arr = jnp.array([seed], dtype=jnp.int32)

    kernel = functools.partial(_two_in_tools_out_kernel,
                               inv_spatial=1.0 / float(S),
                               dropout_p=float(dropout_p),
                               train=bool(train))

    grid_spec = pltpu.PrefetchScalarGridSpec(
        num_scalar_prefetch=0,
        grid=(nb, ns),   # (batch tiles, spatial-reduction tiles) -- reduction last
        in_specs=[
            pl.BlockSpec(memory_space=pltpu.MemorySpace.SMEM),         # seed (scalar)
            pl.BlockSpec((TB, TS, C), lambda b, s: (b, s, 0)),         # top features
            pl.BlockSpec((TB, TS, C), lambda b, s: (b, s, 0)),         # side features
            pl.BlockSpec((f2, nc2), lambda b, s: (0, 0)),              # fused W
            pl.BlockSpec((1, nc2), lambda b, s: (0, 0)),               # fused b
        ],
        out_specs=[
            pl.BlockSpec((TB, nc2), lambda b, s: (b, 0)),              # fused logits
            pl.BlockSpec((TB, f2), lambda b, s: (b, 0)),               # x (post-dropout)
        ],
        scratch_shapes=[
            pltpu.VMEM((TB, C), jnp.float32),   # top pooled-sum accumulator
            pltpu.VMEM((TB, C), jnp.float32),   # side pooled-sum accumulator
        ],
    )

    out_shape = (
        jax.ShapeDtypeStruct((B, nc2), jnp.float32),
        jax.ShapeDtypeStruct((B, f2), jnp.float32),
    )

    out_cat, x = pl.pallas_call(
        kernel,
        grid_spec=grid_spec,
        out_shape=out_shape,
        compiler_params=pltpu.CompilerParams(
            dimension_semantics=("parallel", "arbitrary")),
    )(seed_arr, top3, side3, w_cat, b_cat)

    out_right = out_cat[:, :num_classes]
    out_left = out_cat[:, num_classes:]
    return out_right, out_left, x


if __name__ == "__main__":
    key = jax.random.PRNGKey(0)
    k1, k2, k3, k4, k5, k6 = jax.random.split(key, 6)

    B, H, W = 2, 4, 4
    num_classes = 8
    f2 = 2 * FEATURES_DIM

    # Deterministic synthetic backbone feature maps (stand-in for EfficientNet-B0 output).
    top_fm = jax.random.normal(k1, (B, H, W, FEATURES_DIM), dtype=jnp.float32)
    side_fm = jax.random.normal(k2, (B, H, W, FEATURES_DIM), dtype=jnp.float32)

    # Deterministic head parameters (torch nn.Linear layout: weight [out, in], bias [out]).
    w_right = 0.02 * jax.random.normal(k3, (num_classes, f2), dtype=jnp.float32)
    b_right = 0.01 * jax.random.normal(k4, (num_classes,), dtype=jnp.float32)
    w_left = 0.02 * jax.random.normal(k5, (num_classes, f2), dtype=jnp.float32)
    b_left = 0.01 * jax.random.normal(k6, (num_classes,), dtype=jnp.float32)

    # Feed the HBM-heavy feature maps as bf16 (halves bytes read); heads stay f32.
    top_bf16 = top_fm.astype(jnp.bfloat16)
    side_bf16 = side_fm.astype(jnp.bfloat16)

    out_right, out_left, x_cat = two_in_tools_out(
        top_bf16, side_bf16,
        w_right.T, b_right.reshape(1, -1),
        w_left.T, b_left.reshape(1, -1),
        dropout_p=0.3, train=False,  # eval-mode dropout == identity (inference semantics)
    )
    jax.block_until_ready((out_right, out_left, x_cat))

    # Pure-JAX reference (same bf16 feature inputs, f32 accumulate).
    top_feat = jnp.mean(top_bf16.astype(jnp.float32), axis=(1, 2))
    side_feat = jnp.mean(side_bf16.astype(jnp.float32), axis=(1, 2))
    x_ref = jnp.concatenate([top_feat, side_feat], axis=1)
    r_ref = x_ref @ w_right.T + b_right
    l_ref = x_ref @ w_left.T + b_left
    assert jnp.allclose(x_cat, x_ref, atol=1e-4), "concat mismatch"
    assert jnp.allclose(out_right, r_ref, atol=1e-3), "out_right mismatch"
    assert jnp.allclose(out_left, l_ref, atol=1e-3), "out_left mismatch"

    print("KERNEL_OK")
</pallas_src>

<mosaic_0001>
module attributes {stable_mosaic.version = 11 : i64} {
  func.func @_two_in_tools_out_kernel(%arg0: i32, %arg1: i32, %arg2: memref<1xi32, #tpu.memory_space<smem>>, %arg3: memref<2x16x1280xbf16, #tpu.memory_space<vmem>>, %arg4: memref<2x16x1280xbf16, #tpu.memory_space<vmem>>, %arg5: memref<2560x16xf32, #tpu.memory_space<vmem>>, %arg6: memref<1x16xf32, #tpu.memory_space<vmem>>, %arg7: memref<2x16xf32, #tpu.memory_space<vmem>>, %arg8: memref<2x2560xf32, #tpu.memory_space<vmem>>, %arg9: memref<2x1280xf32, #tpu.memory_space<vmem>>, %arg10: memref<2x1280xf32, #tpu.memory_space<vmem>>) attributes {dimension_semantics = [#tpu.dimension_semantics<parallel>, #tpu.dimension_semantics<arbitrary>], iteration_bounds = array<i64: 1, 1>, scalar_prefetch = 0 : i64, scratch_operands = 2 : i64, tpu.core_type = #tpu.core_type<tc>, window_params = [{transform_indices = @transform_0, window_bounds = array<i64: 1>}, {transform_indices = @transform_1, window_bounds = array<i64: 2, 16, 1280>}, {transform_indices = @transform_2, window_bounds = array<i64: 2, 16, 1280>}, {pipeline_mode = #tpu.pipeline_mode<synchronous>, transform_indices = @transform_3, window_bounds = array<i64: 2560, 16>}, {pipeline_mode = #tpu.pipeline_mode<synchronous>, transform_indices = @transform_4, window_bounds = array<i64: 1, 16>}, {transform_indices = @transform_5, window_bounds = array<i64: 2, 16>}, {transform_indices = @transform_6, window_bounds = array<i64: 2, 2560>}]} {
    %c0_i32 = arith.constant 0 : i32
    %0 = arith.cmpi eq, %arg1, %c0_i32 : i32
    %1 = arith.extui %0 : i1 to i32
    %c0_i32_0 = arith.constant 0 : i32
    %2 = arith.cmpi ne, %1, %c0_i32_0 : i32
    scf.if %2 {
      %cst_17 = arith.constant 0.000000e+00 : f32
      %18 = vector.broadcast %cst_17 : f32 to vector<2x1280xf32>
      %c0_18 = arith.constant 0 : index
      %c0_19 = arith.constant 0 : index
      %19 = vector.load %arg9[%c0_18, %c0_19] : memref<2x1280xf32, #tpu.memory_space<vmem>>, vector<2x1280xf32>
      tpu.vector_store %arg9[%c0_18, %c0_19], %18 {strides = array<i32>} : memref<2x1280xf32, #tpu.memory_space<vmem>>, vector<2x1280xf32>,
      %cst_20 = arith.constant 0.000000e+00 : f32
      %20 = vector.broadcast %cst_20 : f32 to vector<2x1280xf32>
      %c0_21 = arith.constant 0 : index
      %c0_22 = arith.constant 0 : index
      %21 = vector.load %arg10[%c0_21, %c0_22] : memref<2x1280xf32, #tpu.memory_space<vmem>>, vector<2x1280xf32>
      tpu.vector_store %arg10[%c0_21, %c0_22], %20 {strides = array<i32>} : memref<2x1280xf32, #tpu.memory_space<vmem>>, vector<2x1280xf32>,
    } else {
    }
    %c0 = arith.constant 0 : index
    %c0_1 = arith.constant 0 : index
    %3 = vector.load %arg9[%c0, %c0_1] : memref<2x1280xf32, #tpu.memory_space<vmem>>, vector<2x1280xf32>
    %c0_2 = arith.constant 0 : index
    %c0_3 = arith.constant 0 : index
    %c0_4 = arith.constant 0 : index
    %4 = vector.load %arg3[%c0_2, %c0_3, %c0_4] : memref<2x16x1280xbf16, #tpu.memory_space<vmem>>, vector<2x16x1280xbf16>
    %5 = arith.extf %4 : vector<2x16x1280xbf16> to vector<2x16x1280xf32>
    %cst = arith.constant dense<0.000000e+00> : vector<2x1280xf32>
    %6 = vector.multi_reduction <add>, %5, %cst [1] : vector<2x16x1280xf32> to vector<2x1280xf32>
    %7 = arith.addf %3, %6 : vector<2x1280xf32>
    %c0_5 = arith.constant 0 : index
    %c0_6 = arith.constant 0 : index
    %8 = vector.load %arg9[%c0_5, %c0_6] : memref<2x1280xf32, #tpu.memory_space<vmem>>, vector<2x1280xf32>
    tpu.vector_store %arg9[%c0_5, %c0_6], %7 {strides = array<i32>} : memref<2x1280xf32, #tpu.memory_space<vmem>>, vector<2x1280xf32>,
    %c0_7 = arith.constant 0 : index
    %c0_8 = arith.constant 0 : index
    %9 = vector.load %arg10[%c0_7, %c0_8] : memref<2x1280xf32, #tpu.memory_space<vmem>>, vector<2x1280xf32>
    %c0_9 = arith.constant 0 : index
    %c0_10 = arith.constant 0 : index
    %c0_11 = arith.constant 0 : index
    %10 = vector.load %arg4[%c0_9, %c0_10, %c0_11] : memref<2x16x1280xbf16, #tpu.memory_space<vmem>>, vector<2x16x1280xbf16>
    %11 = arith.extf %10 : vector<2x16x1280xbf16> to vector<2x16x1280xf32>
    %cst_12 = arith.constant dense<0.000000e+00> : vector<2x1280xf32>
    %12 = vector.multi_reduction <add>, %11, %cst_12 [1] : vector<2x16x1280xf32> to vector<2x1280xf32>
    %13 = arith.addf %9, %12 : vector<2x1280xf32>
    %c0_13 = arith.constant 0 : index
    %c0_14 = arith.constant 0 : index
    %14 = vector.load %arg10[%c0_13, %c0_14] : memref<2x1280xf32, #tpu.memory_space<vmem>>, vector<2x1280xf32>
    tpu.vector_store %arg10[%c0_13, %c0_14], %13 {strides = array<i32>} : memref<2x1280xf32, #tpu.memory_space<vmem>>, vector<2x1280xf32>,
    %c0_i32_15 = arith.constant 0 : i32
    %15 = arith.cmpi eq, %arg1, %c0_i32_15 : i32
    %16 = arith.extui %15 : i1 to i32
    %c0_i32_16 = arith.constant 0 : i32
    %17 = arith.cmpi ne, %16, %c0_i32_16 : i32
    scf.if %17 {
      %c0_17 = arith.constant 0 : index
      %c0_18 = arith.constant 0 : index
      %18 = vector.load %arg9[%c0_17, %c0_18] : memref<2x1280xf32, #tpu.memory_space<vmem>>, vector<2x1280xf32>
      %cst_19 = arith.constant 6.250000e-02 : f32
      %19 = vector.broadcast %cst_19 : f32 to vector<2x1280xf32>
      %20 = arith.mulf %18, %19 : vector<2x1280xf32>
      %c0_20 = arith.constant 0 : index
      %c0_21 = arith.constant 0 : index
      %21 = vector.load %arg10[%c0_20, %c0_21] : memref<2x1280xf32, #tpu.memory_space<vmem>>, vector<2x1280xf32>
      %cst_22 = arith.constant 6.250000e-02 : f32
      %22 = vector.broadcast %cst_22 : f32 to vector<2x1280xf32>
      %23 = arith.mulf %21, %22 : vector<2x1280xf32>
      %24 = tpu.concatenate %20, %23 in 1 : vector<2x1280xf32>, vector<2x1280xf32> -> vector<2x2560xf32>
      %c0_23 = arith.constant 0 : index
      %c0_24 = arith.constant 0 : index
      %25 = vector.load %arg8[%c0_23, %c0_24] : memref<2x2560xf32, #tpu.memory_space<vmem>>, vector<2x2560xf32>
      tpu.vector_store %arg8[%c0_23, %c0_24], %24 {strides = array<i32>} : memref<2x2560xf32, #tpu.memory_space<vmem>>, vector<2x2560xf32>,
      %c0_25 = arith.constant 0 : index
      %c0_26 = arith.constant 0 : index
      %26 = vector.load %arg5[%c0_25, %c0_26] : memref<2560x16xf32, #tpu.memory_space<vmem>>, vector<2560x16xf32>
      %cst_27 = arith.constant dense<0.000000e+00> : vector<2x16xf32>
      %27 = tpu.matmul %24, %26, %cst_27 {dimension_numbers = #tpu.dot_dimension_numbers<[1], [0], [0], [1], [0, 0, 1, 1], [], []>} : vector<2x2560xf32>, vector<2560x16xf32>, vector<2x16xf32> -> vector<2x16xf32>
      %c0_28 = arith.constant 0 : index
      %c0_29 = arith.constant 0 : index
      %28 = vector.load %arg6[%c0_28, %c0_29] : memref<1x16xf32, #tpu.memory_space<vmem>>, vector<1x16xf32>
      %29 = vector.broadcast %28 : vector<1x16xf32> to vector<2x16xf32>
      %30 = arith.addf %27, %29 : vector<2x16xf32>
      %c0_30 = arith.constant 0 : index
      %c0_31 = arith.constant 0 : index
      %31 = vector.load %arg7[%c0_30, %c0_31] : memref<2x16xf32, #tpu.memory_space<vmem>>, vector<2x16xf32>
      tpu.vector_store %arg7[%c0_30, %c0_31], %30 {strides = array<i32>} : memref<2x16xf32, #tpu.memory_space<vmem>>, vector<2x16xf32>,
    } else {
    }
    return
  }
  func.func @transform_0(%arg0: i32, %arg1: i32) -> i32 {
    %c0_i32 = arith.constant 0 : i32
    %c0_i32_0 = arith.constant 0 : i32
    return %c0_i32 : i32
  }
  func.func @transform_1(%arg0: i32, %arg1: i32) -> (i32, i32, i32) {
    %c0_i32 = arith.constant 0 : i32
    %c0_i32_0 = arith.constant 0 : i32
    return %arg0, %arg1, %c0_i32 : i32, i32, i32
  }
  func.func @transform_2(%arg0: i32, %arg1: i32) -> (i32, i32, i32) {
    %c0_i32 = arith.constant 0 : i32
    %c0_i32_0 = arith.constant 0 : i32
    return %arg0, %arg1, %c0_i32 : i32, i32, i32
  }
  func.func @transform_3(%arg0: i32, %arg1: i32) -> (i32, i32) {
    %c0_i32 = arith.constant 0 : i32
    %c0_i32_0 = arith.constant 0 : i32
    %c0_i32_1 = arith.constant 0 : i32
    return %c0_i32, %c0_i32_0 : i32, i32
  }
  func.func @transform_4(%arg0: i32, %arg1: i32) -> (i32, i32) {
    %c0_i32 = arith.constant 0 : i32
    %c0_i32_0 = arith.constant 0 : i32
    %c0_i32_1 = arith.constant 0 : i32
    return %c0_i32, %c0_i32_0 : i32, i32
  }
  func.func @transform_5(%arg0: i32, %arg1: i32) -> (i32, i32) {
    %c0_i32 = arith.constant 0 : i32
    %c0_i32_0 = arith.constant 0 : i32
    return %arg0, %c0_i32 : i32, i32
  }
  func.func @transform_6(%arg0: i32, %arg1: i32) -> (i32, i32) {
    %c0_i32 = arith.constant 0 : i32
    %c0_i32_0 = arith.constant 0 : i32
    return %arg0, %c0_i32 : i32, i32
  }
}

</mosaic_0001>

<bundles_post_ra>
// kernel: tpu_custom_call.1
= control target key start
LH: loop header
LB: loop body
LE: loop exit
PB: predicated region body
PF: predicated region fallthrough
CT: control target
= control target key end

     0   :  { %13 = vsyncpa [#allocation6], 0  ;;  %v2715_v7 = vmov 0.0   ;;  %v2716_v51 = vmov 1983009808   ;;  %v263_v53 = vlaneseq  ;;  %vm347_vm0 = vcmask 1041409   ;;  %s4528_s0 = inlined_call_operand.<no memory space> [shape: s32[1], index: 0, kind: input, shape index: {}]   ;;  %s4529_s1 = inlined_call_operand.vmem [shape: bf16[2,16,1280], index: 1, kind: input, shape index: {}]   ;;  %s4530_s2 = inlined_call_operand.vmem [shape: bf16[2,16,1280], index: 2, kind: input, shape index: {}]   ;;  %s4531_s3 = inlined_call_operand.vmem [shape: f32[2560,16], index: 3, kind: input, shape index: {}]   ;;  %s4532_s4 = inlined_call_operand.vmem [shape: f32[1,16], index: 4, kind: input, shape index: {}]   ;;  %s4533_s5 = inlined_call_operand.hbm [shape: f32[2,16], index: 5, kind: output, shape index: {0}]   ;;  %s4534_s6 = inlined_call_operand.hbm [shape: f32[2,2560], index: 6, kind: output, shape index: {1}]  }
   0x1   :  { %v951_v0 = vld [vmem:[%s4531_s3 + $0x80] sm:$0xff]  ;;  %v952_v1 = vld [vmem:[%s4531_s3 + $0x88] sm:$0xff]  ;;  %31 = vst [vmem:[#allocation2 + $0x10] sm:$0xf] %v2715_v7  ;;  %34 = vst [vmem:[#allocation3 + $0x10] sm:$0xf] %v2715_v7  ;;  %v261_v52 = vunpack.c.l.s4 %v2716_v51 }
   0x2   :  { %v935_v2 = vld [vmem:[%s4531_s3] sm:$0xff]  ;;  %v2343_v3 = vpack.c.bf16 %v952_v1, %v951_v0  ;;  %v936_v4 = vld [vmem:[%s4531_s3 + $0x8] sm:$0xff]  ;;  %v953_v12 = vld [vmem:[%s4531_s3 + $0x90] sm:$0xff]  ;;  %v264_v7 = vshrl.u32 %v263_v53, 7  ;;  %vm349_vm1 = vcmask 1043459   ;;  %vm351_vm2 = vcmask 1045509  }
   0x3   :  { %v983_v5 = vld [vmem:[%s4531_s3 + $0x180] sm:$0xff]  ;;  %v984_v6 = vld [vmem:[%s4531_s3 + $0x188] sm:$0xff]  ;;  %v2345_v8 = vpack.c.bf16 %v936_v4, %v935_v2  ;;  %v954_v14 = vld [vmem:[%s4531_s3 + $0x98] sm:$0xff]  ;;  %vm353_vm3 = vcmask 1047559  }
   0x4   :  { %v2375_v9 = vpack.c.bf16 %v984_v6, %v983_v5  ;;  %v967_v10 = vld [vmem:[%s4531_s3 + $0x100] sm:$0xff]  ;;  %v968_v11 = vld [vmem:[%s4531_s3 + $0x108] sm:$0xff]  ;;  %2344 = vmatprep.subr.bf16.mxu0 %v2343_v3  ;;  %v937_v15 = vld [vmem:[%s4531_s3 + $0x10] sm:$0xff]  ;;  %v2347_v17 = vpack.c.bf16 %v954_v14, %v953_v12  ;;  %v262_v6 = vunpack.c.0.s8 %v261_v52 }
   0x5   :  { %v2377_v13 = vpack.c.bf16 %v968_v11, %v967_v10  ;;  %v938_v16 = vld [vmem:[%s4531_s3 + $0x18] sm:$0xff]  ;;  %2346 = vmatpush3.bf16.msra.mxu0 %v2345_v8  ;;  %v985_v19 = vld [vmem:[%s4531_s3 + $0x190] sm:$0xff]  ;;  %v955_v24 = vld [vmem:[%s4531_s3 + $0xa0] sm:$0xff] }
   0x6   :  { %2376 = vmatprep.subr.bf16.mxu1 %v2375_v9  ;;  %v2349_v18 = vpack.c.bf16 %v938_v16, %v937_v15  ;;  %v986_v20 = vld [vmem:[%s4531_s3 + $0x198] sm:$0xff]  ;;  %v969_v21 = vld [vmem:[%s4531_s3 + $0x110] sm:$0xff]  ;;  %v956_v25 = vld [vmem:[%s4531_s3 + $0xa8] sm:$0xff]  ;;  %2348 = vmatprep.subr.bf16.mxu0 %v2347_v17 }
   0x7   :  { %2378 = vmatpush3.bf16.msra.mxu1 %v2377_v13  ;;  %v2379_v22 = vpack.c.bf16 %v986_v20, %v985_v19  ;;  %v970_v23 = vld [vmem:[%s4531_s3 + $0x118] sm:$0xff]  ;;  %v2351_v27 = vpack.c.bf16 %v956_v25, %v955_v24  ;;  %v939_v28 = vld [vmem:[%s4531_s3 + $0x20] sm:$0xff]  ;;  %v940_v29 = vld [vmem:[%s4531_s3 + $0x28] sm:$0xff] }
   0x8   :  { %v2381_v26 = vpack.c.bf16 %v970_v23, %v969_v21  ;;  %v987_v30 = vld [vmem:[%s4531_s3 + $0x1a0] sm:$0xff]  ;;  %v988_v31 = vld [vmem:[%s4531_s3 + $0x1a8] sm:$0xff]  ;;  %v2353_v34 = vpack.c.bf16 %v940_v29, %v939_v28  ;;  %v957_v36 = vld [vmem:[%s4531_s3 + $0xb0] sm:$0xff] }
   0x9   :  { %2380 = vmatprep.subr.bf16.mxu1 %v2379_v22  ;;  %v971_v32 = vld [vmem:[%s4531_s3 + $0x120] sm:$0xff]  ;;  %v972_v33 = vld [vmem:[%s4531_s3 + $0x128] sm:$0xff]  ;;  %2350 = vmatpush3.bf16.msra.mxu0 %v2349_v18  ;;  %v2383_v35 = vpack.c.bf16 %v988_v31, %v987_v30  ;;  %v958_v37 = vld [vmem:[%s4531_s3 + $0xb8] sm:$0xff] }
   0xa   :  { %v941_v38 = vld [vmem:[%s4531_s3 + $0x30] sm:$0xff]  ;;  %2352 = vmatprep.subr.bf16.mxu0 %v2351_v27  ;;  %v2385_v39 = vpack.c.bf16 %v972_v33, %v971_v32  ;;  %v2355_v40 = vpack.c.bf16 %v958_v37, %v957_v36  ;;  %v942_v41 = vld [vmem:[%s4531_s3 + $0x38] sm:$0xff]  ;;  %v959_v47 = vld [vmem:[%s4531_s3 + $0xc0] sm:$0xff] }
   0xb   :  { %2382 = vmatpush3.bf16.msra.mxu1 %v2381_v26  ;;  %v989_v42 = vld [vmem:[%s4531_s3 + $0x1b0] sm:$0xff]  ;;  %v990_v43 = vld [vmem:[%s4531_s3 + $0x1b8] sm:$0xff]  ;;  %v960_v48 = vld [vmem:[%s4531_s3 + $0xc8] sm:$0xff]  ;;  %v2357_v54 = vpack.c.bf16 %v942_v41, %v941_v38  ;;  %v2951_v26 = vsub.s32 %v262_v6, %v264_v7 }
   0xc   :  { %2384 = vmatprep.subr.bf16.mxu1 %v2383_v35  ;;  %v2387_v44 = vpack.c.bf16 %v990_v43, %v989_v42  ;;  %v973_v45 = vld [vmem:[%s4531_s3 + $0x130] sm:$0xff]  ;;  %v974_v46 = vld [vmem:[%s4531_s3 + $0x138] sm:$0xff]  ;;  %v943_v49 = vld [vmem:[%s4531_s3 + $0x40] sm:$0xff]  ;;  %v2359_v59 = vpack.c.bf16 %v960_v48, %v959_v47 }
   0xd   :  { %v944_v50 = vld [vmem:[%s4531_s3 + $0x48] sm:$0xff]  ;;  %2354 = vmatpush3.bf16.msra.mxu0 %v2353_v34  ;;  %v991_v55 = vld [vmem:[%s4531_s3 + $0x1c0] sm:$0xff]  ;;  %v2389_v58 = vpack.c.bf16 %v974_v46, %v973_v45  ;;  %v961_v61 = vld [vmem:[%s4531_s3 + $0xd0] sm:$0xff] }
   0xe   :  { %v992_v56 = vld [vmem:[%s4531_s3 + $0x1c8] sm:$0xff]  ;;  %v975_v57 = vld [vmem:[%s4531_s3 + $0x140] sm:$0xff]  ;;  %2356 = vmatprep.subr.bf16.mxu0 %v2355_v40  ;;  %v962_v62 = vld [vmem:[%s4531_s3 + $0xd8] sm:$0xff]  ;;  %v2361_v8 = vpack.c.bf16 %v944_v50, %v943_v49 }
   0xf   :  { %2386 = vmatpush3.bf16.msra.mxu1 %v2385_v39  ;;  %v976_v60 = vld [vmem:[%s4531_s3 + $0x148] sm:$0xff]  ;;  %v2391_v63 = vpack.c.bf16 %v992_v56, %v991_v55  ;;  %v945_v0 = vld [vmem:[%s4531_s3 + $0x50] sm:$0xff]  ;;  %v946_v1 = vld [vmem:[%s4531_s3 + $0x58] sm:$0xff]  ;;  %v2363_v13 = vpack.c.bf16 %v962_v62, %v961_v61 }
  0x10   :  { %2388 = vmatprep.subr.bf16.mxu1 %v2387_v44  ;;  %v993_v2 = vld [vmem:[%s4531_s3 + $0x1d0] sm:$0xff]  ;;  %v994_v3 = vld [vmem:[%s4531_s3 + $0x1d8] sm:$0xff]  ;;  %v963_v9 = vld [vmem:[%s4531_s3 + $0xe0] sm:$0xff]  ;;  %v2393_v12 = vpack.c.bf16 %v976_v60, %v975_v57  ;;  %v2365_v21 = vpack.c.bf16 %v946_v1, %v945_v0 }
  0x11   :  { %v2895_v4 = vld [vmem:[%s4531_s3 + $0x150] sm:$0xff]  ;;  %v978_v5 = vld [vmem:[%s4531_s3 + $0x158] sm:$0xff]  ;;  %2358 = vmatpush3.bf16.msra.mxu0 %v2357_v54  ;;  %v964_v10 = vld [vmem:[%s4531_s3 + $0xe8] sm:$0xff]  ;;  %v2395_v17 = vpack.c.bf16 %v994_v3, %v993_v2 }
  0x12   :  { %v2909_v11 = vld [vmem:[%s4531_s3 + $0x60] sm:$0xff]  ;;  %2360 = vmatprep.subr.bf16.mxu0 %v2359_v59  ;;  %v2914_v14 = vld [vmem:[%s4531_s3 + $0x68] sm:$0xff]  ;;  %v2935_v20 = vld [vmem:[%s4531_s3 + $0xf0] sm:$0xff]  ;;  %v2397_v22 = vpack.c.bf16 %v978_v5, %v2895_v4  ;;  %v2367_v27 = vpack.c.bf16 %v964_v10, %v963_v9 }
  0x13   :  { %2390 = vmatpush3.bf16.msra.mxu1 %v2389_v58  ;;  %v995_v15 = vld [vmem:[%s4531_s3 + $0x1e0] sm:$0xff]  ;;  %v996_v16 = vld [vmem:[%s4531_s3 + $0x1e8] sm:$0xff]  ;;  %v966_v23 = vld [vmem:[%s4531_s3 + $0xf8] sm:$0xff]  ;;  %v2369_v28 = vpack.c.bf16 %v2914_v14, %v2909_v11 }
  0x14   :  { %2392 = vmatprep.subr.bf16.mxu1 %v2391_v63  ;;  %v2925_v18 = vld [vmem:[%s4531_s3 + $0x160] sm:$0xff]  ;;  %v2930_v19 = vld [vmem:[%s4531_s3 + $0x168] sm:$0xff]  ;;  %v2944_v24 = vld [vmem:[%s4531_s3 + $0x70] sm:$0xff]  ;;  %v2399_v29 = vpack.c.bf16 %v996_v16, %v995_v15  ;;  %v2371_v34 = vpack.c.bf16 %v966_v23, %v2935_v20 }
  0x15   :  { %v2949_v25 = vld [vmem:[%s4531_s3 + $0x78] sm:$0xff]  ;;  %2362 = vmatpush3.bf16.msra.mxu0 %v2361_v8  ;;  %v2401_v30 = vpack.c.bf16 %v2930_v19, %v2925_v18  ;;  %v997_v31 = vld [vmem:[%s4531_s3 + $0x1f0] sm:$0xff]  ;;  %v38_v38 = vld [vmem:[%s4529_s1] sm:$0xff] }
  0x16   :  { %v998_v32 = vld [vmem:[%s4531_s3 + $0x1f8] sm:$0xff]  ;;  %v2966_v33 = vld [vmem:[%s4531_s3 + $0x170] sm:$0xff]  ;;  %2364 = vmatprep.subr.bf16.mxu0 %v2363_v13  ;;  %v2373_v35 = vpack.c.bf16 %v2949_v25, %v2944_v24  ;;  %v39_v39 = vld [vmem:[%s4529_s1 + $0x8] sm:$0xff]  ;;  %v58_v44 = vunpack.c.l.bf16 %v38_v38  ;;  %v59_v45 = vunpack.c.h.bf16 %v38_v38 }
  0x17   :  { %2394 = vmatpush3.bf16.msra.mxu1 %v2393_v12  ;;  %v2403_v36 = vpack.c.bf16 %v998_v32, %v997_v31  ;;  %v2974_v37 = vld [vmem:[%s4531_s3 + $0x178] sm:$0xff]  ;;  %v43_v41 = vld [vmem:[%s4529_s1 + $0x28] sm:$0xff]  ;;  %v44_v42 = vld [vmem:[%s4529_s1 + $0x30] sm:$0xff]  ;;  %v60_v46 = vunpack.c.l.bf16 %v39_v39  ;;  %v61_v50 = vunpack.c.h.bf16 %v39_v39 }
  0x18   :  { %2396 = vmatprep.subr.bf16.mxu1 %v2395_v17  ;;  %v2405_v40 = vpack.c.bf16 %v2974_v37, %v2966_v33  ;;  %v48_v43 = vld [vmem:[%s4529_s1 + $0x50] sm:$0xff]  ;;  %v49_v47 = vld [vmem:[%s4529_s1 + $0x58] sm:$0xff]  ;;  %v54_v49 = vld [vmem:[%s4529_s1 + $0x80] sm:$0xff]  ;;  %v68_v51 = vunpack.c.l.bf16 %v43_v41  ;;  %v69_v52 = vunpack.c.h.bf16 %v43_v41  ;;  %v70_v53 = vunpack.c.l.bf16 %v44_v42 }
  0x19   :  { %v53_v48 = vld [vmem:[%s4529_s1 + $0x78] sm:$0xff]  ;;  %2366 = vmatpush3.bf16.msra.mxu0 %v2365_v21  ;;  %v71_v54 = vunpack.c.h.bf16 %v44_v42  ;;  %v78_v55 = vunpack.c.l.bf16 %v48_v43  ;;  %v79_v56 = vunpack.c.h.bf16 %v48_v43  ;;  %v80_v57 = vunpack.c.l.bf16 %v49_v47 }
  0x1a   :  { %2368 = vmatprep.subr.bf16.mxu0 %v2367_v27  ;;  %v81_v58 = vunpack.c.h.bf16 %v49_v47  ;;  %v88_v59 = vunpack.c.l.bf16 %v53_v48  ;;  %v89_v60 = vunpack.c.h.bf16 %v53_v48  ;;  %v90_v61 = vunpack.c.l.bf16 %v54_v49  ;;  %v1015_v47 = vld [vmem:[%s4531_s3 + $0x280] sm:$0xff]  ;;  %v1016_v48 = vld [vmem:[%s4531_s3 + $0x288] sm:$0xff] }
  0x1b   :  { %2398 = vmatpush3.bf16.msra.mxu1 %v2397_v22  ;;  %v91_v62 = vunpack.c.h.bf16 %v54_v49  ;;  %v98_v63 = vadd.f32 %v68_v51, %v58_v44  ;;  %v105_v0 = vadd.f32 %v69_v52, %v59_v45  ;;  %v112_v1 = vadd.f32 %v70_v53, %v60_v46  ;;  %v1047_v53 = vld [vmem:[%s4531_s3 + $0x380] sm:$0xff] }
  0x1c   :  { %2400 = vmatprep.subr.bf16.mxu1 %v2399_v29  ;;  %v119_v2 = vadd.f32 %v71_v54, %v61_v50  ;;  %v168_v3 = vadd.f32 %v88_v59, %v78_v55  ;;  %v175_v4 = vadd.f32 %v89_v60, %v79_v56  ;;  %v182_v5 = vadd.f32 %v90_v61, %v80_v57  ;;  %v1048_v54 = vld [vmem:[%s4531_s3 + $0x388] sm:$0xff] }
  0x1d   :  { %2370 = vmatpush3.bf16.msra.mxu0 %v2369_v28  ;;  %v99_v6 = vrot.slane %v98_v63, 4  ;;  %v106_v7 = vrot.slane %v105_v0, 4  ;;  %v113_v8 = vrot.slane %v112_v1, 4  ;;  %v189_v9 = vadd.f32 %v91_v62, %v81_v58 }
  0x1e   :  { %2372 = vmatprep.subr.bf16.mxu0 %v2371_v34  ;;  %v120_v10 = vrot.slane %v119_v2, 4  ;;  %v169_v11 = vrot.slane %v168_v3, 4  ;;  %v176_v12 = vrot.slane %v175_v4, 4  ;;  %v183_v13 = vrot.slane %v182_v5, 4 }
  0x1f   :  { %2402 = vmatpush3.bf16.msra.mxu1 %v2401_v30  ;;  %v100_v14 = vadd.f32 %v99_v6, %v98_v63  ;;  %v107_v15 = vadd.f32 %v106_v7, %v105_v0  ;;  %v114_v16 = vadd.f32 %v113_v8, %v112_v1  ;;  %v190_v17 = vrot.slane %v189_v9, 4  ;;  %v3021_v6 = vld [vmem:[%s4531_s3 + $0x200] sm:$0xff]  ;;  %v3026_v7 = vld [vmem:[%s4531_s3 + $0x208] sm:$0xff] }
  0x20   :  { %2404 = vmatprep.subr.bf16.mxu1 %v2403_v36  ;;  %v121_v18 = vadd.f32 %v120_v10, %v119_v2  ;;  %v170_v19 = vadd.f32 %v169_v11, %v168_v3  ;;  %v177_v20 = vadd.f32 %v176_v12, %v175_v4  ;;  %v184_v21 = vadd.f32 %v183_v13, %v182_v5  ;;  %v3031_v8 = vld [vmem:[%s4531_s3 + $0x300] sm:$0xff]  ;;  %v3041_v12 = vld [vmem:[%s4531_s3 + $0x290] sm:$0xff]  ;;  %v3046_v13 = vld [vmem:[%s4531_s3 + $0x298] sm:$0xff] }
  0x21   :  { %2374 = vmatpush3.bf16.msra.mxu0 %v2373_v35  ;;  %v101_v22 = vrot.slane %v100_v14, 2  ;;  %v108_v23 = vrot.slane %v107_v15, 2  ;;  %v115_v24 = vrot.slane %v114_v16, 2  ;;  %v191_v25 = vadd.f32 %v190_v17, %v189_v9  ;;  %v3036_v9 = vld [vmem:[%s4531_s3 + $0x308] sm:$0xff]  ;;  %v3066_v17 = vld [vmem:[%s4531_s3 + $0x398] sm:$0xff] }
  0x22   :  { %v122_v27 = vrot.slane %v121_v18, 2  ;;  %v171_v28 = vrot.slane %v170_v19, 2  ;;  %v178_v29 = vrot.slane %v177_v20, 2  ;;  %v185_v30 = vrot.slane %v184_v21, 2 }
  0x23   :  { %2406 = vmatpush3.bf16.msra.mxu1 %v2405_v40  ;;  %v102_v31 = vadd.f32 %v101_v22, %v100_v14  ;;  %v109_v32 = vadd.f32 %v108_v23, %v107_v15  ;;  %v116_v33 = vadd.f32 %v115_v24, %v114_v16  ;;  %v192_v34 = vrot.slane %v191_v25, 2  ;;  %v3051_v14 = vld [vmem:[%s4531_s3 + $0x210] sm:$0xff]  ;;  %v3056_v15 = vld [vmem:[%s4531_s3 + $0x218] sm:$0xff] }
  0x24   :  { %v123_v36 = vadd.f32 %v122_v27, %v121_v18  ;;  %v172_v37 = vadd.f32 %v171_v28, %v170_v19  ;;  %v179_v38 = vadd.f32 %v178_v29, %v177_v20  ;;  %v186_v39 = vadd.f32 %v185_v30, %v184_v21  ;;  %v3061_v16 = vld [vmem:[%s4531_s3 + $0x390] sm:$0xff]  ;;  %v41_v20 = vld [vmem:[%s4529_s1 + $0x18] sm:$0xff]  ;;  %v46_v30 = vld [vmem:[%s4529_s1 + $0x40] sm:$0xff] }
  0x25   :  { %v103_v41 = vrot.slane %v102_v31, 1  ;;  %v110_v42 = vrot.slane %v109_v32, 1  ;;  %v117_v35 = vrot.slane %v116_v33, 1  ;;  %v193_v43 = vadd.f32 %v192_v34, %v191_v25  ;;  %v40_v19 = vld [vmem:[%s4529_s1 + $0x10] sm:$0xff]  ;;  %v45_v23 = vld [vmem:[%s4529_s1 + $0x38] sm:$0xff]  ;;  %v3108_v34 = vld [vmem:[%s4531_s3 + $0x2a0] sm:$0xff] }
  0x26   :  { %v124_v44 = vrot.slane %v123_v36, 1  ;;  %v173_v45 = vrot.slane %v172_v37, 1  ;;  %v180_v46 = vrot.slane %v179_v38, 1  ;;  %v187_v40 = vrot.slane %v186_v39, 1  ;;  %v3091_v29 = vld [vmem:[%s4531_s3 + $0x310] sm:$0xff] }
  0x27   :  { %v104_v49 = vadd.f32 %v103_v41, %v102_v31  ;;  %v111_v50 = vadd.f32 %v110_v42, %v109_v32  ;;  %v118_v51 = vadd.f32 %v117_v35, %v116_v33  ;;  %v194_v52 = vrot.slane %v193_v43, 1  ;;  %v50_v31 = vld [vmem:[%s4529_s1 + $0x60] sm:$0xff]  ;;  %v3103_v33 = vld [vmem:[%s4531_s3 + $0x318] sm:$0xff]  ;;  %v3119_v42 = vld [vmem:[%s4531_s3 + $0x2a8] sm:$0xff] }
  0x28   :  { %v125_v55 = vadd.f32 %v124_v44, %v123_v36  ;;  %v174_v56 = vadd.f32 %v173_v45, %v172_v37  ;;  %v181_v57 = vadd.f32 %v180_v46, %v179_v38  ;;  %v188_v58 = vadd.f32 %v187_v40, %v186_v39  ;;  %v3113_v36 = vld [vmem:[%s4529_s1 + $0x68] sm:$0xff] }
  0x29   :  { %v195_v59 = vadd.f32 %v194_v52, %v193_v43  ;;  %v258_v60 = vcombine.low %v104_v49, %v111_v50  ;;  %v2407_v61 = vpack.c.bf16 %v1016_v48, %v1015_v47  ;;  %v2439_v0 = vpack.c.bf16 %v1048_v54, %v1047_v53  ;;  %v55_v35 = vld [vmem:[%s4529_s1 + $0x88] sm:$0xff]  ;;  %v3127_v43 = vld [vmem:[%s4529_s1 + $0x90] sm:$0xff] }
  0x2a   :  { %v259_v62 = vcombine.low %v118_v51, %v125_v55  ;;  %v300_v63 = vcombine.low %v174_v56, %v181_v57  ;;  %v2409_v21 = vpack.c.bf16 %v3026_v7, %v3021_v6  ;;  %v2441_v22 = vpack.c.bf16 %v3036_v9, %v3031_v8  ;;  %v3166_v6 = vld [vmem:[%s4531_s3 + $0x320] sm:$0xff]  ;;  %v3171_v7 = vld [vmem:[%s4531_s3 + $0x2b0] sm:$0xff] }
  0x2b   :  { %v266_v1 = vrot.slane %v258_v60, %v2951_v26  ;;  %v301_v2 = vcombine.low %v188_v58, %v195_v59  ;;  %2408 = vmatprep.subr.bf16.mxu0 %v2407_v61  ;;  %2440 = vmatprep.subr.bf16.mxu1 %v2439_v0  ;;  %v2411_v25 = vpack.c.bf16 %v3046_v13, %v3041_v12  ;;  %v62_v37 = vunpack.c.l.bf16 %v40_v19 }
  0x2c   :  { %v273_v3 = vrot.slane %v259_v62, %v2951_v26  ;;  %v308_v4 = vrot.slane %v300_v63, %v2951_v26  ;;  %v2413_v27 = vpack.c.bf16 %v3056_v15, %v3051_v14  ;;  %v2443_v28 = vpack.c.bf16 %v3066_v17, %v3061_v16  ;;  %v3247_v14 = vld [vmem:[%s4531_s3 + $0x2c8] sm:$0xff] }
  0x2d   :  { %v315_v5 = vrot.slane %v301_v2, %v2951_v26  ;;  %v63_v38 = vunpack.c.h.bf16 %v40_v19  ;;  %v64_v39 = vunpack.c.l.bf16 %v41_v20  ;;  %v65_v44 = vunpack.c.h.bf16 %v41_v20 }
  0x2e   :  { %v274_v10 = vcombine.low %v266_v1, %v273_v3  ;;  %v72_v45 = vunpack.c.l.bf16 %v45_v23  ;;  %v73_v46 = vunpack.c.h.bf16 %v45_v23  ;;  %v74_v47 = vunpack.c.l.bf16 %v46_v30 }
  0x2f   :  { %v316_v11 = vcombine.low %v308_v4, %v315_v5  ;;  %v75_v48 = vunpack.c.h.bf16 %v46_v30  ;;  %v82_v49 = vunpack.c.l.bf16 %v50_v31  ;;  %v2445_v50 = vpack.c.bf16 %v3103_v33, %v3091_v29  ;;  %v3289_v29 = vld [vmem:[%s4531_s3 + $0x348] sm:$0xff]  ;;  %v3294_v33 = vld [vmem:[%s4531_s3 + $0x2d0] sm:$0xff] }
  0x30   :  { %v83_v51 = vunpack.c.h.bf16 %v50_v31  ;;  %v84_v52 = vunpack.c.l.bf16 %v3113_v36  ;;  %v2415_v53 = vpack.c.bf16 %v3119_v42, %v3108_v34  ;;  %v92_v54 = vunpack.c.l.bf16 %v55_v35  ;;  %v3274_v42 = vld [vmem:[%s4531_s3 + $0x3c0] sm:$0xff] }
  0x31   :  { %v346_v18 = vrot.slane %v316_v11, 7  ;;  %v93_v55 = vunpack.c.h.bf16 %v55_v35  ;;  %v94_v56 = vunpack.c.l.bf16 %v3127_v43  ;;  %v126_v58 = vadd.f32 %v72_v45, %v62_v37 }
  0x32   :  { %v133_v59 = vadd.f32 %v73_v46, %v63_v38  ;;  %v140_v60 = vadd.f32 %v74_v47, %v64_v39  ;;  %v147_v61 = vadd.f32 %v75_v48, %v65_v44  ;;  %v196_v62 = vadd.f32 %v92_v54, %v82_v49  ;;  %v3141_v44 = vld [vmem:[%s4531_s3 + $0x220] sm:$0xff]  ;;  %v1052_v54 = vld [vmem:[%s4531_s3 + $0x3a8] sm:$0xff] }
  0x33   :  { %v348_v24 = vsel %vm347_vm0, %v346_v18, %v274_v10  ;;  %v203_v63 = vadd.f32 %v93_v55, %v83_v51  ;;  %v210_v0 = vadd.f32 %v94_v56, %v84_v52  ;;  %v127_v3 = vrot.slane %v126_v58, 4  ;;  %v3150_v51 = vld [vmem:[%s4531_s3 + $0x228] sm:$0xff]  ;;  %v1051_v52 = vld [vmem:[%s4531_s3 + $0x3a0] sm:$0xff] }
  0x34   :  { %v350_v32 = vsel %vm349_vm1, %v346_v18, %v348_v24  ;;  %v134_v4 = vrot.slane %v133_v59, 4  ;;  %v141_v5 = vrot.slane %v140_v60, 4  ;;  %v148_v10 = vrot.slane %v147_v61, 4 }
  0x35   :  { %v352_v41 = vsel %vm351_vm2, %v346_v18, %v350_v32  ;;  %v197_v11 = vrot.slane %v196_v62, 4  ;;  %v128_v23 = vadd.f32 %v127_v3, %v126_v58  ;;  %v211_v56 = vrot.slane %v210_v0, 4  ;;  %v3261_v3 = vld [vmem:[%s4531_s3 + $0x248] sm:$0xff] }
  0x36   :  { %v354_v40 = vsel %vm353_vm3, %v346_v18, %v352_v41  ;;  %v204_v18 = vrot.slane %v203_v63, 4  ;;  %v135_v24 = vadd.f32 %v134_v4, %v133_v59  ;;  %v142_v30 = vadd.f32 %v141_v5, %v140_v60  ;;  %v3192_v59 = vld [vmem:[%s4531_s3 + $0x328] sm:$0xff]  ;;  %v3202_v60 = vld [vmem:[%s4531_s3 + $0x238] sm:$0xff] }
  0x37   :  { %v721_v57 = vmul.f32 0.0625, %v354_v40  ;;  %v149_v31 = vadd.f32 %v148_v10, %v147_v61  ;;  %v198_v32 = vadd.f32 %v197_v11, %v196_v62  ;;  %v129_v41 = vrot.slane %v128_v23, 2 }
  0x38   :  { %v205_v37 = vadd.f32 %v204_v18, %v203_v63  ;;  %v136_v35 = vrot.slane %v135_v24, 2  ;;  %v143_v45 = vrot.slane %v142_v30, 2  ;;  %v95_v61 = vunpack.c.h.bf16 %v3127_v43  ;;  %v3220_v63 = vld [vmem:[%s4531_s3 + $0x3b8] sm:$0xff]  ;;  %v3225_v43 = vld [vmem:[%s4531_s3 + $0x330] sm:$0xff]  ;;  %v3284_v18 = vld [vmem:[%s4531_s3 + $0x340] sm:$0xff] }
  0x39   :  { %v740_v1 = vrot.slane %v721_v57, %v2951_v26  ;;  %v733_v2 = vcombine.high %v721_v57, %v721_v57  ;;  %v150_v46 = vrot.slane %v149_v31, 2  ;;  %v199_v40 = vrot.slane %v198_v32, 2 }
  0x3a   :  { %v206_v47 = vrot.slane %v205_v37, 2  ;;  %v3158_v55 = vadd.f32 %v129_v41, %v128_v23  ;;  %v85_v57 = vunpack.c.h.bf16 %v3113_v36  ;;  %v3179_v58 = vadd.f32 %v136_v35, %v135_v24  ;;  %v3197_v36 = vld [vmem:[%s4531_s3 + $0x230] sm:$0xff]  ;;  %v3335_v41 = vld [vmem:[%s4531_s3 + $0x358] sm:$0xff] }
  0x3b   :  { %v748_v19 = vcombine.high %v740_v1, %v740_v1  ;;  %v747_v20 = vrot.slane %v733_v2, %v2951_v26  ;;  %v3181_v12 = vadd.f32 %v143_v45, %v142_v30  ;;  %v3183_v13 = vadd.f32 %v150_v46, %v149_v31  ;;  %v3344_v45 = vld [vmem:[%s4531_s3 + $0x2e0] sm:$0xff]  ;;  %v3349_v46 = vld [vmem:[%s4531_s3 + $0x2e8] sm:$0xff] }
  0x3c   :  { %v3205_v62 = vadd.f32 %v199_v40, %v198_v32  ;;  %v3207_v8 = vadd.f32 %v206_v47, %v205_v37  ;;  %v2447_v9 = vpack.c.bf16 %v1052_v54, %v1051_v52  ;;  %v2417_v16 = vpack.c.bf16 %v3150_v51, %v3141_v44  ;;  %v3320_v37 = vld [vmem:[%s4531_s3 + $0x3d0] sm:$0xff]  ;;  %v3354_v40 = vld [vmem:[%s4531_s3 + $0x260] sm:$0xff]  ;;  %v3359_v47 = vld [vmem:[%s4531_s3 + $0x268] sm:$0xff] }
  0x3d   :  { %v840_v38 = vcombine.low %v740_v1, %v748_v19  ;;  %1326 = vmatprep.mubr.f32.mxu0 %v748_v19  ;;  %v749_v39 = vcombine.high %v747_v20, %v747_v20  ;;  %v131_v15 = vrot.slane %v3158_v55, 1  ;;  %v138_v4 = vrot.slane %v3179_v58, 1  ;;  %v3304_v19 = vld [vmem:[%s4531_s3 + $0x250] sm:$0xff]  ;;  %v3364_v51 = vld [vmem:[%s4531_s3 + $0x3e0] sm:$0xff]  ;;  %v3369_v52 = vld [vmem:[%s4531_s3 + $0x3e8] sm:$0xff] }
  0x3e   :  { %1327 = vmatmul.mubr.f32.vlgmr.msra.gmra.mrb[0].mxu0 %v740_v1  ;;  %v212_v1 = vadd.f32 %v211_v56, %v210_v0  ;;  %v3242_v0 = vld [vmem:[%s4531_s3 + $0x2c0] sm:$0xff]  ;;  %v145_v5 = vrot.slane %v3181_v12, 1  ;;  %v152_v10 = vrot.slane %v3183_v13, 1  ;;  %v2449_v34 = vpack.c.bf16 %v3192_v59, %v3166_v6  ;;  %v3379_v56 = vld [vmem:[%s4531_s3 + $0x368] sm:$0xff]  ;;  %v3390_v59 = vld [vmem:[%s4531_s3 + $0x2f0] sm:$0xff] }
  0x3f   :  { %v848_v48 = vrot.slane %v840_v38, %v2951_v26  ;;  %2410 = vmatpush3.bf16.msra.mxu0 %v2409_v21  ;;  %v841_v49 = vcombine.low %v747_v20, %v749_v39  ;;  %1396 = vmatprep.mubr.f32.mxu1 %v749_v39  ;;  %v3176_v21 = vld [vmem:[%s4531_s3 + $0x2b8] sm:$0xff]  ;;  %v201_v23 = vrot.slane %v3205_v62, 1  ;;  %v208_v24 = vrot.slane %v3207_v8, 1  ;;  %v3330_v39 = vld [vmem:[%s4531_s3 + $0x350] sm:$0xff]  ;;  %v3374_v54 = vld [vmem:[%s4531_s3 + $0x360] sm:$0xff] }
  0x40   :  { %1397 = vmatmul.mubr.f32.vlgmr.msra.gmra.mrb[0].mxu1 %v747_v20  ;;  %2412 = vmatprep.subr.bf16.mxu0 %v2411_v25  ;;  %v2419_v17 = vpack.c.bf16 %v3176_v21, %v3171_v7  ;;  %v213_v11 = vrot.slane %v212_v1, 2  ;;  %v3309_v20 = vld [vmem:[%s4531_s3 + $0x258] sm:$0xff]  ;;  %v217_v30 = vadd.f32 %v95_v61, %v85_v57  ;;  %v2421_v31 = vpack.c.bf16 %v3202_v60, %v3197_v36 }
  0x41   :  { %v855_v25 = vrot.slane %v841_v49, %v2951_v26  ;;  %2442 = vmatpush3.bf16.msra.mxu1 %v2441_v22  ;;  %v3215_v22 = vld [vmem:[%s4531_s3 + $0x3b0] sm:$0xff]  ;;  %v3325_v38 = vld [vmem:[%s4531_s3 + $0x3d8] sm:$0xff]  ;;  %v2423_v44 = vpack.c.bf16 %v3247_v14, %v3242_v0  ;;  %v132_v6 = vadd.f32 %v131_v15, %v3158_v55  ;;  %v139_v7 = vadd.f32 %v138_v4, %v3179_v58  ;;  %v3444_v0 = vld [vmem:[%s4531_s3 + $0x480] sm:$0xff] }
  0x42   :  { %2444 = vmatprep.subr.bf16.mxu1 %v2443_v28  ;;  %v3237_v28 = vld [vmem:[%s4531_s3 + $0x338] sm:$0xff]  ;;  %v2451_v32 = vpack.c.bf16 %v3220_v63, %v3215_v22  ;;  %v218_v49 = vrot.slane %v217_v30, 4  ;;  %v146_v21 = vadd.f32 %v145_v5, %v3181_v12  ;;  %v153_v57 = vadd.f32 %v152_v10, %v3183_v13  ;;  %v3400_v55 = vld [vmem:[%s4531_s3 + $0x270] sm:$0xff]  ;;  %v3449_v14 = vld [vmem:[%s4531_s3 + $0x488] sm:$0xff] }
  0x43   :  { %v856_v2 = vcombine.low %v848_v48, %v855_v25  ;;  %2414 = vmatpush3.bf16.msra.mxu0 %v2413_v27  ;;  %v3256_v27 = vld [vmem:[%s4531_s3 + $0x240] sm:$0xff]  ;;  %v2453_v35 = vpack.c.bf16 %v3237_v28, %v3225_v43  ;;  %v214_v48 = vadd.f32 %v213_v11, %v212_v1  ;;  %v3395_v36 = vld [vmem:[%s4531_s3 + $0x2f8] sm:$0xff]  ;;  %v202_v12 = vadd.f32 %v201_v23, %v3205_v62  ;;  %v3420_v62 = vld [vmem:[%s4531_s3 + $0x3f0] sm:$0xff] }
  0x44   :  { %2416 = vmatprep.subr.bf16.mxu0 %v2415_v53  ;;  %v3279_v53 = vld [vmem:[%s4531_s3 + $0x3c8] sm:$0xff]  ;;  %v2425_v25 = vpack.c.bf16 %v3261_v3, %v3256_v27  ;;  %v3405_v58 = vld [vmem:[%s4531_s3 + $0x278] sm:$0xff]  ;;  %v209_v13 = vadd.f32 %v208_v24, %v3207_v8  ;;  %v219_v60 = vadd.f32 %v218_v49, %v217_v30  ;;  %v2429_v63 = vpack.c.bf16 %v3309_v20, %v3304_v19  ;;  %v3430_v43 = vld [vmem:[%s4531_s3 + $0x370] sm:$0xff] }
  0x45   :  { %930 = vst [vmem:[#allocation7] sm:$0xff] %v856_v2  ;;  %2446 = vmatpush3.bf16.msra.mxu1 %v2445_v50  ;;  %v3299_v50 = vld [vmem:[%s4531_s3 + $0x2d8] sm:$0xff]  ;;  %v2455_v61 = vpack.c.bf16 %v3279_v53, %v3274_v42  ;;  %v2459_v1 = vpack.c.bf16 %v3325_v38, %v3320_v37  ;;  %v2461_v2 = vpack.c.bf16 %v3335_v41, %v3330_v39  ;;  %v3458_v5 = vld [vmem:[%s4531_s3 + $0x400] sm:$0xff]  ;;  %v3463_v10 = vld [vmem:[%s4531_s3 + $0x408] sm:$0xff] }
  0x46   :  { %2448 = vmatprep.subr.bf16.mxu1 %v2447_v9  ;;  %v2457_v9 = vpack.c.bf16 %v3289_v29, %v3284_v18  ;;  %v2427_v22 = vpack.c.bf16 %v3299_v50, %v3294_v33  ;;  %v3425_v8 = vld [vmem:[%s4531_s3 + $0x3f8] sm:$0xff]  ;;  %v2431_v15 = vpack.c.bf16 %v3349_v46, %v3344_v45  ;;  %v2433_v27 = vpack.c.bf16 %v3359_v47, %v3354_v40  ;;  %v3468_v11 = vld [vmem:[%s4531_s3 + $0x580] sm:$0xff]  ;;  %v3477_v29 = vld [vmem:[%s4531_s3 + $0x588] sm:$0xff] }
  0x47   :  { %2418 = vmatpush3.bf16.msra.mxu0 %v2417_v16  ;;  %v215_v16 = vrot.slane %v214_v48, 1  ;;  %v3439_v28 = vld [vmem:[%s4531_s3 + $0x378] sm:$0xff]  ;;  %v275_v3 = vcombine.low %v132_v6, %v139_v7  ;;  %v276_v4 = vcombine.low %v146_v21, %v153_v57  ;;  %v2465_v42 = vpack.c.bf16 %v3379_v56, %v3374_v54  ;;  %v3482_v33 = vld [vmem:[%s4531_s3 + $0x500] sm:$0xff]  ;;  %v3487_v50 = vld [vmem:[%s4531_s3 + $0x508] sm:$0xff] }
  0x48   :  { %2420 = vmatprep.subr.bf16.mxu0 %v2419_v17  ;;  %v220_v17 = vrot.slane %v219_v60, 2  ;;  %v317_v18 = vcombine.low %v202_v12, %v209_v13  ;;  %v2435_v23 = vpack.c.bf16 %v3395_v36, %v3390_v59  ;;  %v2437_v24 = vpack.c.bf16 %v3405_v58, %v3400_v55  ;;  %v3505_v37 = vld [vmem:[%s4531_s3 + $0x498] sm:$0xff]  ;;  %v42_v38 = vld [vmem:[%s4529_s1 + $0x20] sm:$0xff]  ;;  %v47_v49 = vld [vmem:[%s4529_s1 + $0x48] sm:$0xff] }
  0x49   :  { %2450 = vmatpush3.bf16.msra.mxu1 %v2449_v34  ;;  %v2463_v34 = vpack.c.bf16 %v3369_v52, %v3364_v51  ;;  %v2467_v30 = vpack.c.bf16 %v3425_v8, %v3420_v62  ;;  %v2471_v45 = vpack.c.bf16 %v3449_v14, %v3444_v0  ;;  %v52_v6 = vld [vmem:[%s4529_s1 + $0x70] sm:$0xff]  ;;  %v3521_v7 = vrot.slane %v275_v3, %v2951_v26  ;;  %v3567_v57 = vld [vmem:[%s4531_s3 + $0x518] sm:$0xff] }
  0x4a   :  { %2452 = vmatprep.subr.bf16.mxu1 %v2451_v32  ;;  %v221_v53 = vadd.f32 %v220_v17, %v219_v60  ;;  %v3500_v32 = vld [vmem:[%s4531_s3 + $0x490] sm:$0xff]  ;;  %v325_v13 = vrot.slane %v317_v18, %v2951_v26  ;;  %v3554_v17 = vld [vmem:[%s4531_s3 + $0x598] sm:$0xff]  ;;  %v77_v18 = vunpack.c.h.bf16 %v47_v49  ;;  %v3572_v60 = vld [vmem:[%s4531_s3 + $0x4a0] sm:$0xff] }
  0x4b   :  { %2422 = vmatpush3.bf16.msra.mxu0 %v2421_v31  ;;  %v2469_v31 = vpack.c.bf16 %v3439_v28, %v3430_v43  ;;  %v3559_v3 = vld [vmem:[%s4531_s3 + $0x510] sm:$0xff]  ;;  %v3661_v0 = vld [vmem:[%s4530_s2 + $0x78] sm:$0xff] }
  0x4c   :  { %2424 = vmatprep.subr.bf16.mxu0 %v2423_v44  ;;  %v222_v44 = vrot.slane %v221_v53, 1  ;;  %v2509_v39 = vpack.c.bf16 %v3567_v57, %v3559_v3 }
  0x4d   :  { %2454 = vmatpush3.bf16.msra.mxu1 %v2453_v35  ;;  %v216_v35 = vadd.f32 %v215_v16, %v214_v48  ;;  %v3524_v48 = vrot.slane %v276_v4, %v2951_v26  ;;  %v66_v16 = vunpack.c.l.bf16 %v42_v38  ;;  %v67_v4 = vunpack.c.h.bf16 %v42_v38  ;;  %v3577_v38 = vld [vmem:[%s4531_s3 + $0x4a8] sm:$0xff] }
  0x4e   :  { %2456 = vmatprep.subr.bf16.mxu1 %v2455_v61  ;;  %v223_v12 = vadd.f32 %v222_v44, %v221_v53  ;;  %v3539_v61 = vld [vmem:[%s4531_s3 + $0x410] sm:$0xff]  ;;  %v76_v53 = vunpack.c.l.bf16 %v47_v49  ;;  %v86_v44 = vunpack.c.l.bf16 %v52_v6  ;;  %v87_v49 = vunpack.c.h.bf16 %v52_v6 }
  0x4f   :  { %2426 = vmatpush3.bf16.msra.mxu0 %v2425_v25  ;;  %v57_v25 = vld [vmem:[%s4529_s1 + $0x98] sm:$0xff]  ;;  %v291_v20 = vcombine.low %v3521_v7, %v3524_v48  ;;  %v161_v21 = vadd.f32 %v77_v18, %v67_v4  ;;  %v2479_v41 = vpack.c.bf16 %v3577_v38, %v3572_v60  ;;  %v1088_v38 = vld [vmem:[%s4531_s3 + $0x4c8] sm:$0xff] }
  0x50   :  { %2428 = vmatprep.subr.bf16.mxu0 %v2427_v22  ;;  %v3544_v22 = vld [vmem:[%s4531_s3 + $0x418] sm:$0xff]  ;;  %v96_v46 = vunpack.c.l.bf16 %v57_v25  ;;  %v97_v19 = vunpack.c.h.bf16 %v57_v25  ;;  %v154_v6 = vadd.f32 %v76_v53, %v66_v16  ;;  %v386_v53 = vld [vmem:[%s4530_s2 + $0x28] sm:$0xff] }
  0x51   :  { %2458 = vmatpush3.bf16.msra.mxu1 %v2457_v9  ;;  %v3549_v9 = vld [vmem:[%s4531_s3 + $0x590] sm:$0xff]  ;;  %v162_v16 = vrot.slane %v161_v21, 4 }
  0x52   :  { %2460 = vmatprep.subr.bf16.mxu1 %v2459_v1  ;;  %v318_v1 = vcombine.low %v216_v35, %v223_v12  ;;  %v3586_v35 = vld [vmem:[%s4531_s3 + $0x5a0] sm:$0xff]  ;;  %v3591_v12 = vld [vmem:[%s4531_s3 + $0x5a8] sm:$0xff]  ;;  %v2507_v7 = vpack.c.bf16 %v3554_v17, %v3549_v9  ;;  %v224_v48 = vadd.f32 %v96_v46, %v86_v44  ;;  %v231_v25 = vadd.f32 %v97_v19, %v87_v49  ;;  %v387_v49 = vld [vmem:[%s4530_s2 + $0x30] sm:$0xff] }
  0x53   :  { %2430 = vmatpush3.bf16.msra.mxu0 %v2429_v63  ;;  %v3602_v63 = vld [vmem:[%s4530_s2] sm:$0xff]  ;;  %v382_v46 = vld [vmem:[%s4530_s2 + $0x8] sm:$0xff]  ;;  %v2511_v51 = vpack.c.bf16 %v3591_v12, %v3586_v35  ;;  %v163_v44 = vadd.f32 %v162_v16, %v161_v21  ;;  %v411_v21 = vunpack.c.l.bf16 %v386_v53  ;;  %v413_v55 = vunpack.c.l.bf16 %v387_v49  ;;  %v1070_v9 = vld [vmem:[%s4531_s3 + $0x438] sm:$0xff] }
  0x54   :  { %2432 = vmatprep.subr.bf16.mxu0 %v2431_v15  ;;  %v332_v15 = vrot.slane %v318_v1, %v2951_v26  ;;  %v225_v52 = vrot.slane %v224_v48, 4  ;;  %v401_v1 = vunpack.c.l.bf16 %v3602_v63  ;;  %v402_v40 = vunpack.c.h.bf16 %v3602_v63  ;;  %v3643_v63 = vld [vmem:[%s4530_s2 + $0x50] sm:$0xff]  ;;  %v1072_v35 = vld [vmem:[%s4531_s3 + $0x448] sm:$0xff] }
  0x55   :  { %2462 = vmatpush3.bf16.msra.mxu1 %v2461_v2  ;;  %v155_v2 = vrot.slane %v154_v6, 4  ;;  %v403_v19 = vunpack.c.l.bf16 %v382_v46  ;;  %v164_v36 = vrot.slane %v163_v44, 2  ;;  %v414_v14 = vunpack.c.h.bf16 %v387_v49 }
  0x56   :  { %2464 = vmatprep.subr.bf16.mxu1 %v2463_v34  ;;  %v333_v4 = vcombine.low %v325_v13, %v332_v15  ;;  %v232_v34 = vrot.slane %v231_v25, 4  ;;  %v3656_v15 = vld [vmem:[%s4530_s2 + $0x58] sm:$0xff]  ;;  %v422_v16 = vunpack.c.h.bf16 %v3643_v63 }
  0x57   :  { %2434 = vmatpush3.bf16.msra.mxu0 %v2433_v27  ;;  %v156_v18 = vadd.f32 %v155_v2, %v154_v6  ;;  %v226_v27 = vadd.f32 %v225_v52, %v224_v48  ;;  %v412_v6 = vunpack.c.h.bf16 %v386_v53  ;;  %v4535_v48 = vpack.c.bf16 %v3477_v29, %v3468_v11 }
  0x58   :  { %2436 = vmatprep.subr.bf16.mxu0 %v2435_v23  ;;  %v357_v47 = vrot.slane %v333_v4, 7  ;;  %v233_v13 = vadd.f32 %v232_v34, %v231_v25  ;;  %v404_v23 = vunpack.c.h.bf16 %v382_v46  ;;  %v423_v52 = vunpack.c.l.bf16 %v3656_v15 }
  0x59   :  { %2466 = vmatpush3.bf16.msra.mxu1 %v2465_v42  ;;  %v157_v59 = vrot.slane %v156_v18, 2  ;;  %v227_v56 = vrot.slane %v226_v27, 2  ;;  %v431_v34 = vunpack.c.l.bf16 %v3661_v0  ;;  %v448_v29 = vadd.f32 %v412_v6, %v402_v40 }
  0x5a   :  { %2468 = vmatprep.subr.bf16.mxu1 %v2467_v30  ;;  %v358_v54 = vsel %vm347_vm0, %v357_v47, %v291_v20  ;;  %v234_v42 = vrot.slane %v233_v13, 2  ;;  %v165_v30 = vadd.f32 %v164_v36, %v163_v44 }
  0x5b   :  { %2438 = vmatpush3.bf16.msra.mxu0 %v2437_v24  ;;  %v359_v62 = vsel %vm349_vm1, %v357_v47, %v358_v54  ;;  %v158_v8 = vadd.f32 %v157_v59, %v156_v18  ;;  %v228_v24 = vadd.f32 %v227_v56, %v226_v27  ;;  %v455_v27 = vadd.f32 %v413_v55, %v403_v19 }
  0x5c   :  { %2472 = vmatprep.subr.bf16.mxu0 %v2471_v45  ;;  %v360_v58 = vsel %vm351_vm2, %v357_v47, %v359_v62  ;;  %v235_v20 = vadd.f32 %v234_v42, %v233_v13  ;;  %v166_v28 = vrot.slane %v165_v30, 1  ;;  %v462_v13 = vadd.f32 %v414_v14, %v404_v23  ;;  %v3678_v14 = vld [vmem:[%s4530_s2 + $0x80] sm:$0xff] }
  0x5d   :  { %2470 = vmatpush3.bf16.msra.mxu1 %v2469_v31  ;;  %v361_v45 = vsel %vm353_vm3, %v357_v47, %v360_v58  ;;  %v159_v43 = vrot.slane %v158_v8, 1  ;;  %v421_v31 = vunpack.c.l.bf16 %v3643_v63  ;;  %v229_v25 = vrot.slane %v228_v24, 1 }
  0x5e   :  { %2504 = vmatprep.subr.bf16.mxu1 %v4535_v48  ;;  %v236_v2 = vrot.slane %v235_v20, 1  ;;  %v167_v4 = vadd.f32 %v166_v28, %v165_v30  ;;  %v722_v53 = vmul.f32 0.0625, %v361_v45  ;;  %v441_v47 = vadd.f32 %v411_v21, %v401_v1 }
  0x5f   :  { %v160_v46 = vadd.f32 %v159_v43, %v158_v8  ;;  %v230_v18 = vadd.f32 %v229_v25, %v228_v24  ;;  %v449_v42 = vrot.slane %v448_v29, 4  ;;  %v456_v62 = vrot.slane %v455_v27, 4 }
  0x60   :  { %v237_v44 = vadd.f32 %v236_v2, %v235_v20  ;;  %v757_v49 = vrot.slane %v722_v53, %v2951_v26  ;;  %v750_v59 = vcombine.high %v722_v53, %v722_v53  ;;  %v442_v54 = vrot.slane %v441_v47, 4  ;;  %v3693_v53 = vld [vmem:[%s4531_s3 + $0x520] sm:$0xff] }
  0x61   :  { %v292_v11 = vcombine.low %v160_v46, %v167_v4  ;;  %v463_v8 = vrot.slane %v462_v13, 4  ;;  %v450_v21 = vadd.f32 %v449_v42, %v448_v29  ;;  %v457_v40 = vadd.f32 %v456_v62, %v455_v27  ;;  %v1067_v4 = vld [vmem:[%s4531_s3 + $0x420] sm:$0xff] }
  0x62   :  { %v334_v36 = vcombine.low %v230_v18, %v237_v44  ;;  %v765_v30 = vcombine.high %v757_v49, %v757_v49  ;;  %v764_v58 = vrot.slane %v750_v59, %v2951_v26  ;;  %v443_v1 = vadd.f32 %v442_v54, %v441_v47  ;;  %v1085_v47 = vld [vmem:[%s4531_s3 + $0x4b0] sm:$0xff]  ;;  %v1086_v59 = vld [vmem:[%s4531_s3 + $0x4b8] sm:$0xff] }
  0x63   :  { %v299_v56 = vrot.slane %v292_v11, %v2951_v26  ;;  %v464_v19 = vadd.f32 %v463_v8, %v462_v13  ;;  %v511_v23 = vadd.f32 %v431_v34, %v421_v31  ;;  %v451_v48 = vrot.slane %v450_v21, 2  ;;  %v1068_v34 = vld [vmem:[%s4531_s3 + $0x428] sm:$0xff]  ;;  %v37_v11 = vld [vmem:[#allocation2 + $0x10] sm:$0xf] }
  0x64   :  { %v341_v24 = vrot.slane %v334_v36, %v2951_v26  ;;  %v857_v6 = vcombine.low %v757_v49, %v765_v30  ;;  %1466 = vmatprep.mubr.f32.mxu0 %v765_v30  ;;  %v766_v55 = vcombine.high %v764_v58, %v764_v58  ;;  %v444_v45 = vrot.slane %v443_v1, 2  ;;  %v1117_v36 = vld [vmem:[%s4531_s3 + $0x5b0] sm:$0xff] }
  0x65   :  { %1467 = vmatmul.mubr.f32.vlgmr.msra.gmra.mrb[2].mxu0 %v757_v49  ;;  %v458_v43 = vrot.slane %v457_v40, 2  ;;  %v465_v28 = vrot.slane %v464_v19, 2  ;;  %v512_v25 = vrot.slane %v511_v23, 4  ;;  %v4536_v31 = vpack.c.bf16 %v3463_v10, %v3458_v5  ;;  %v1100_v10 = vld [vmem:[%s4531_s3 + $0x528] sm:$0xff] }
  0x66   :  { %v364_v20 = vrot.slane %v341_v24, 7  ;;  %v865_v2 = vrot.slane %v857_v6, %v2951_v26  ;;  %v858_v46 = vcombine.low %v764_v58, %v766_v55  ;;  %1536 = vmatprep.mubr.f32.mxu1 %v766_v55  ;;  %v424_v44 = vunpack.c.h.bf16 %v3656_v15  ;;  %v1071_v15 = vld [vmem:[%s4531_s3 + $0x440] sm:$0xff] }
  0x67   :  { %2474 = vmatpush3.bf16.msra.mxu0 %v4536_v31  ;;  %1537 = vmatmul.mubr.f32.vlgmr.msra.gmra.mrb[2].mxu1 %v764_v58  ;;  %v4537_v5 = vpack.c.bf16 %v3505_v37, %v3500_v32  ;;  %v432_v27 = vunpack.c.h.bf16 %v3661_v0  ;;  %v433_v13 = vunpack.c.l.bf16 %v3678_v14  ;;  %v434_v49 = vunpack.c.h.bf16 %v3678_v14  ;;  %v1118_v0 = vld [vmem:[%s4531_s3 + $0x5b8] sm:$0xff] }
  0x68   :  { %v365_v18 = vsel %vm347_vm0, %v364_v20, %v299_v56  ;;  %v872_v32 = vrot.slane %v858_v46, %v2951_v26  ;;  %v4538_v37 = vpack.c.bf16 %v3487_v50, %v3482_v33  ;;  %v445_v56 = vadd.f32 %v444_v45, %v443_v1  ;;  %v1069_v1 = vld [vmem:[%s4531_s3 + $0x430] sm:$0xff]  ;;  %v1090_v31 = vld [vmem:[%s4531_s3 + $0x4d8] sm:$0xff] }
  0x69   :  { %2476 = vmatprep.subr.bf16.mxu0 %v4537_v5  ;;  %v366_v29 = vsel %vm349_vm1, %v364_v20, %v365_v18  ;;  %v452_v42 = vadd.f32 %v451_v48, %v450_v21  ;;  %v459_v50 = vadd.f32 %v458_v43, %v457_v40  ;;  %v466_v62 = vadd.f32 %v465_v28, %v464_v19  ;;  %v1087_v40 = vld [vmem:[%s4531_s3 + $0x4c0] sm:$0xff]  ;;  %v1089_v46 = vld [vmem:[%s4531_s3 + $0x4d0] sm:$0xff]  ;;  %v3815_v5 = vld [vmem:[%s4531_s3 + $0x458] sm:$0xff] }
  0x6a   :  { %2506 = vmatpush3.bf16.msra.mxu1 %v4538_v37  ;;  %v367_v54 = vsel %vm351_vm2, %v364_v20, %v366_v29  ;;  %v513_v8 = vadd.f32 %v512_v25, %v511_v23  ;;  %v873_v30 = vcombine.low %v865_v2, %v872_v32  ;;  %v4539_v58 = vpack.c.bf16 %v3544_v22, %v3539_v61  ;;  %v3744_v61 = vld [vmem:[%s4531_s3 + $0x530] sm:$0xff]  ;;  %v3749_v22 = vld [vmem:[%s4531_s3 + $0x538] sm:$0xff]  ;;  %v3770_v23 = vld [vmem:[%s4531_s3 + $0x5c8] sm:$0xff] }
  0x6b   :  { %2508 = vmatprep.subr.bf16.mxu1 %v2507_v7  ;;  %v368_v33 = vsel %vm353_vm3, %v364_v20, %v367_v54  ;;  %v2481_v24 = vpack.c.bf16 %v1068_v34, %v1067_v4  ;;  %v2513_v6 = vpack.c.bf16 %v1100_v10, %v3693_v53  ;;  %v2483_v7 = vpack.c.bf16 %v1086_v59, %v1085_v47  ;;  %v3795_v2 = vld [vmem:[%s4531_s3 + $0x548] sm:$0xff]  ;;  %v3820_v10 = vld [vmem:[%s4531_s3 + $0x5d0] sm:$0xff]  ;;  %v1122_v47 = vld [vmem:[%s4531_s3 + $0x5d8] sm:$0xff] }
  0x6c   :  { %2478 = vmatpush3.bf16.msra.mxu0 %v4539_v58  ;;  %v374_v17 = vadd.f32 %v368_v33, %v37_v11  ;;  %v2515_v21 = vpack.c.bf16 %v1118_v0, %v1117_v36  ;;  %v514_v19 = vrot.slane %v513_v8, 2  ;;  %v518_v60 = vadd.f32 %v432_v27, %v422_v16  ;;  %931 = vst [vmem:[#allocation7 + $0x8] sm:$0xff] %v873_v30  ;;  %v3832_v32 = vld [vmem:[%s4531_s3 + $0x550] sm:$0xff]  ;;  %v3837_v37 = vld [vmem:[%s4531_s3 + $0x558] sm:$0xff]  ;;  %v3842_v59 = vld [vmem:[%s4531_s3 + $0x4e0] sm:$0xff] }
  0x6d   :  { %2480 = vmatprep.subr.bf16.mxu0 %v2479_v41  ;;  %v3765_v41 = vld [vmem:[%s4531_s3 + $0x5c0] sm:$0xff]  ;;  %v446_v63 = vrot.slane %v445_v56, 1  ;;  %v453_v16 = vrot.slane %v452_v42, 1  ;;  %v525_v57 = vadd.f32 %v433_v13, %v423_v52  ;;  %v532_v3 = vadd.f32 %v434_v49, %v424_v44  ;;  %v3810_v44 = vld [vmem:[%s4531_s3 + $0x450] sm:$0xff]  ;;  %v3847_v36 = vld [vmem:[%s4531_s3 + $0x4e8] sm:$0xff] }
  0x6e   :  { %2510 = vmatpush3.bf16.msra.mxu1 %v2509_v39  ;;  %377 = vst [vmem:[#allocation2 + $0x10] sm:$0xf] %v374_v17  ;;  %v460_v39 = vrot.slane %v459_v50, 1  ;;  %v467_v55 = vrot.slane %v466_v62, 1  ;;  %v515_v20 = vadd.f32 %v514_v19, %v513_v8  ;;  %v519_v14 = vrot.slane %v518_v60, 4  ;;  %v3852_v0 = vld [vmem:[%s4531_s3 + $0x460] sm:$0xff] }
  0x6f   :  { %2512 = vmatprep.subr.bf16.mxu1 %v2511_v51  ;;  %v2485_v45 = vpack.c.bf16 %v1070_v9, %v1069_v1  ;;  %v526_v48 = vrot.slane %v525_v57, 4  ;;  %v533_v43 = vrot.slane %v532_v3, 4  ;;  %v2517_v28 = vpack.c.bf16 %v3749_v22, %v3744_v61  ;;  %v3790_v51 = vld [vmem:[%s4531_s3 + $0x540] sm:$0xff]  ;;  %v3880_v1 = vld [vmem:[%s4531_s3 + $0x568] sm:$0xff]  ;;  %v3890_v61 = vld [vmem:[%s4531_s3 + $0x4f8] sm:$0xff] }
  0x70   :  { %2482 = vmatpush3.bf16.msra.mxu0 %v2481_v24  ;;  %v2487_v25 = vpack.c.bf16 %v1088_v38, %v1087_v40  ;;  %v2519_v12 = vpack.c.bf16 %v3770_v23, %v3765_v41  ;;  %v520_v52 = vadd.f32 %v519_v14, %v518_v60  ;;  %v3803_v4 = vadd.f32 %v446_v63, %v445_v56  ;;  %v3870_v24 = vld [vmem:[%s4531_s3 + $0x5e8] sm:$0xff]  ;;  %v3895_v22 = vld [vmem:[%s4531_s3 + $0x470] sm:$0xff]  ;;  %v3900_v40 = vld [vmem:[%s4531_s3 + $0x478] sm:$0xff] }
  0x71   :  { %2484 = vmatprep.subr.bf16.mxu0 %v2483_v7  ;;  %v3805_v34 = vadd.f32 %v453_v16, %v452_v42  ;;  %v527_v53 = vadd.f32 %v526_v48, %v525_v57  ;;  %v534_v18 = vadd.f32 %v533_v43, %v532_v3  ;;  %v3825_v11 = vadd.f32 %v460_v39, %v459_v50  ;;  %v3859_v50 = vld [vmem:[%s4531_s3 + $0x468] sm:$0xff]  ;;  %v3911_v63 = vld [vmem:[%s4531_s3 + $0x5f0] sm:$0xff]  ;;  %v3916_v16 = vld [vmem:[%s4531_s3 + $0x5f8] sm:$0xff] }
  0x72   :  { %2514 = vmatpush3.bf16.msra.mxu1 %v2513_v6  ;;  %v3827_v29 = vadd.f32 %v467_v55, %v466_v62  ;;  %v516_v27 = vrot.slane %v515_v20, 1  ;;  %v521_v13 = vrot.slane %v520_v52, 2  ;;  %v2489_v49 = vpack.c.bf16 %v1072_v35, %v1071_v15  ;;  %v3864_v62 = vld [vmem:[%s4531_s3 + $0x5e0] sm:$0xff]  ;;  %v3924_v3 = vld [vmem:[%s4531_s3 + $0x570] sm:$0xff]  ;;  %v3935_v48 = vld [vmem:[%s4531_s3 + $0x578] sm:$0xff] }
  0x73   :  { %2516 = vmatprep.subr.bf16.mxu1 %v2515_v21  ;;  %v528_v54 = vrot.slane %v527_v53, 2  ;;  %v535_v56 = vrot.slane %v534_v18, 2  ;;  %v2521_v42 = vpack.c.bf16 %v3795_v2, %v3790_v51  ;;  %v2491_v33 = vpack.c.bf16 %v1090_v31, %v1089_v46  ;;  %v3875_v6 = vld [vmem:[%s4531_s3 + $0x560] sm:$0xff]  ;;  %v3885_v21 = vld [vmem:[%s4531_s3 + $0x4f0] sm:$0xff] }
  0x74   :  { %2486 = vmatpush3.bf16.msra.mxu0 %v2485_v45  ;;  %v522_v30 = vadd.f32 %v521_v13, %v520_v52  ;;  %v2523_v58 = vpack.c.bf16 %v1122_v47, %v3820_v10  ;;  %v517_v19 = vadd.f32 %v516_v27, %v515_v20  ;;  %v601_v38 = vcombine.low %v3803_v4, %v3805_v34  ;;  %v3940_v43 = vld [vmem:[%s4531_s3 + $0x680] sm:$0xff] }
  0x75   :  { %2488 = vmatprep.subr.bf16.mxu0 %v2487_v25  ;;  %v720_v8 = vld [vmem:[#allocation2 + $0x10] sm:$0xf]  ;;  %v529_v17 = vadd.f32 %v528_v54, %v527_v53  ;;  %v536_v7 = vadd.f32 %v535_v56, %v534_v18  ;;  %v602_v41 = vcombine.low %v3825_v11, %v3827_v29  ;;  %v2493_v23 = vpack.c.bf16 %v3815_v5, %v3810_v44 }
  0x76   :  { %2518 = vmatpush3.bf16.msra.mxu1 %v2517_v28  ;;  %v723_v9 = vmul.f32 0.0625, %v720_v8  ;;  %v523_v60 = vrot.slane %v522_v30, 1  ;;  %v2525_v20 = vpack.c.bf16 %v3837_v37, %v3832_v32  ;;  %v2495_v14 = vpack.c.bf16 %v3847_v36, %v3842_v59 }
  0x77   :  { %2520 = vmatprep.subr.bf16.mxu1 %v2519_v12  ;;  %v530_v39 = vrot.slane %v529_v17, 1  ;;  %v537_v55 = vrot.slane %v536_v7, 1  ;;  %v2497_v45 = vpack.c.bf16 %v3859_v50, %v3852_v0 }
  0x78   :  { %2490 = vmatpush3.bf16.msra.mxu0 %v2489_v49  ;;  %v3919_v57 = vrot.slane %v723_v9, %v2951_v26  ;;  %v524_v28 = vadd.f32 %v523_v60, %v522_v30 }
  0x79   :  { %2492 = vmatprep.subr.bf16.mxu0 %v2491_v33 }
  0x7a   :  { %14 = vsyncpa [#allocation8], 0  ;;  %2522 = vmatpush3.bf16.msra.mxu1 %v2521_v42  ;;  %v2527_v25 = vpack.c.bf16 %v3870_v24, %v3864_v62  ;;  %v3946_v15 = vcombine.high %v3919_v57, %v3919_v57  ;;  %v3951_v35 = vld [vmem:[%s4531_s3 + $0x688] sm:$0xff]  ;;  %v531_v12 = vadd.f32 %v530_v39, %v529_v17  ;;  %v538_v51 = vadd.f32 %v537_v55, %v536_v7  ;;  %v3956_v52 = vld [vmem:[%s4531_s3 + $0x600] sm:$0xff] }
  0x7b   :  { %v3961_v2 = vld [vmem:[%s4531_s3 + $0x608] sm:$0xff]  ;;  %2524 = vmatprep.subr.bf16.mxu1 %v2523_v58  ;;  %v2529_v46 = vpack.c.bf16 %v3880_v1, %v3875_v6  ;;  %v609_v31 = vrot.slane %v601_v38, %v2951_v26  ;;  %v616_v4 = vrot.slane %v602_v41, %v2951_v26  ;;  %v643_v34 = vcombine.low %v517_v19, %v524_v28  ;;  %v3970_v53 = vld [vmem:[%s4531_s3 + $0x780] sm:$0xff]  ;;  %v383_v44 = vld [vmem:[%s4530_s2 + $0x10] sm:$0xff] }
  0x7c   :  { %v3975_v18 = vld [vmem:[%s4531_s3 + $0x788] sm:$0xff]  ;;  %2494 = vmatpush3.bf16.msra.mxu0 %v2493_v23  ;;  %v2499_v5 = vpack.c.bf16 %v3890_v61, %v3885_v21  ;;  %v2501_v10 = vpack.c.bf16 %v3900_v40, %v3895_v22  ;;  %1606 = vmatprep.mubr.f32.mxu0 %v3946_v15  ;;  %v644_v47 = vcombine.low %v531_v12, %v538_v51  ;;  %v3988_v11 = vld [vmem:[%s4531_s3 + $0x700] sm:$0xff]  ;;  %v384_v27 = vld [vmem:[%s4530_s2 + $0x18] sm:$0xff]  ;;  %v405_v50 = vunpack.c.l.bf16 %v383_v44 }
  0x7d   :  { %v3993_v29 = vld [vmem:[%s4531_s3 + $0x708] sm:$0xff]  ;;  %2496 = vmatprep.subr.bf16.mxu0 %v2495_v14  ;;  %v2531_v13 = vpack.c.bf16 %v3916_v16, %v3911_v63  ;;  %v2533_v49 = vpack.c.bf16 %v3935_v48, %v3924_v3  ;;  %v2535_v32 = vpack.c.bf16 %v3951_v35, %v3940_v43  ;;  %v651_v37 = vrot.slane %v643_v34, %v2951_v26  ;;  %v4008_v59 = vld [vmem:[%s4531_s3 + $0x690] sm:$0xff]  ;;  %v388_v36 = vld [vmem:[%s4530_s2 + $0x38] sm:$0xff] }
  0x7e   :  { %2526 = vmatpush3.bf16.msra.mxu1 %v2525_v20  ;;  %v658_v0 = vrot.slane %v644_v47, %v2951_v26  ;;  %v2537_v54 = vpack.c.bf16 %v3961_v2, %v3956_v52  ;;  %v4019_v56 = vld [vmem:[%s4531_s3 + $0x698] sm:$0xff]  ;;  %v389_v42 = vld [vmem:[%s4530_s2 + $0x40] sm:$0xff]  ;;  %v406_v62 = vunpack.c.h.bf16 %v383_v44  ;;  %v617_v8 = vcombine.low %v609_v31, %v616_v4  ;;  %v4034_v24 = vld [vmem:[%s4531_s3 + $0x610] sm:$0xff] }
  0x7f   :  { %v393_v33 = vld [vmem:[%s4530_s2 + $0x60] sm:$0xff]  ;;  %2528 = vmatprep.subr.bf16.mxu1 %v2527_v25  ;;  %v2567_v30 = vpack.c.bf16 %v3975_v18, %v3970_v53  ;;  %v2569_v58 = vpack.c.bf16 %v3993_v29, %v3988_v11  ;;  %v4039_v6 = vld [vmem:[%s4531_s3 + $0x618] sm:$0xff]  ;;  %v398_v1 = vld [vmem:[%s4530_s2 + $0x88] sm:$0xff]  ;;  %v407_v9 = vunpack.c.l.bf16 %v384_v27  ;;  %v408_v61 = vunpack.c.h.bf16 %v384_v27 }
  0x80   :  { %2498 = vmatpush3.bf16.msra.mxu0 %v2497_v45  ;;  %v659_v17 = vcombine.low %v651_v37, %v658_v0  ;;  %v4047_v7 = vld [vmem:[%s4530_s2 + $0x68] sm:$0xff]  ;;  %v4052_v21 = vld [vmem:[%s4530_s2 + $0x90] sm:$0xff]  ;;  %v415_v22 = vunpack.c.l.bf16 %v388_v36  ;;  %v416_v40 = vunpack.c.h.bf16 %v388_v36  ;;  %v417_v19 = vunpack.c.l.bf16 %v389_v42  ;;  %v1147_v31 = vld [vmem:[%s4531_s3 + $0x6a0] sm:$0xff] }
  0x81   :  { %2500 = vmatprep.subr.bf16.mxu0 %v2499_v5  ;;  %v418_v60 = vunpack.c.h.bf16 %v389_v42  ;;  %v425_v38 = vunpack.c.l.bf16 %v393_v33  ;;  %v426_v41 = vunpack.c.h.bf16 %v393_v33  ;;  %v2539_v63 = vpack.c.bf16 %v4019_v56, %v4008_v59  ;;  %v4065_v35 = vld [vmem:[%s4531_s3 + $0x790] sm:$0xff]  ;;  %v1148_v4 = vld [vmem:[%s4531_s3 + $0x6a8] sm:$0xff]  ;;  %v1150_v42 = vld [vmem:[%s4531_s3 + $0x6b8] sm:$0xff] }
  0x82   :  { %2530 = vmatpush3.bf16.msra.mxu1 %v2529_v46  ;;  %v687_v23 = vrot.slane %v659_v17, 7  ;;  %v2541_v16 = vpack.c.bf16 %v4039_v6, %v4034_v24  ;;  %v435_v3 = vunpack.c.l.bf16 %v398_v1  ;;  %v427_v39 = vunpack.c.l.bf16 %v4047_v7  ;;  %v4071_v46 = vld [vmem:[%s4531_s3 + $0x798] sm:$0xff]  ;;  %v4084_v5 = vld [vmem:[%s4531_s3 + $0x710] sm:$0xff] }
  0x83   :  { %2532 = vmatprep.subr.bf16.mxu1 %v2531_v13  ;;  %v436_v55 = vunpack.c.h.bf16 %v398_v1  ;;  %v437_v20 = vunpack.c.l.bf16 %v4052_v21  ;;  %v469_v14 = vadd.f32 %v415_v22, %v405_v50  ;;  %v476_v48 = vadd.f32 %v416_v40, %v406_v62  ;;  %v1134_v24 = vld [vmem:[%s4531_s3 + $0x638] sm:$0xff] }
  0x84   :  { %2502 = vmatpush3.bf16.msra.mxu0 %v2501_v10  ;;  %v688_v45 = vsel %vm347_vm0, %v687_v23, %v617_v8  ;;  %v483_v43 = vadd.f32 %v417_v19, %v407_v9  ;;  %v490_v28 = vadd.f32 %v418_v60, %v408_v61  ;;  %v539_v51 = vadd.f32 %v435_v3, %v425_v38  ;;  %v4089_v10 = vld [vmem:[%s4531_s3 + $0x718] sm:$0xff] }
  0x85   :  { %2536 = vmatprep.subr.bf16.mxu0 %v2535_v32  ;;  %v689_v25 = vsel %vm349_vm1, %v687_v23, %v688_v45  ;;  %v470_v12 = vrot.slane %v469_v14, 4  ;;  %v546_v52 = vadd.f32 %v436_v55, %v426_v41  ;;  %v477_v34 = vrot.slane %v476_v48, 4  ;;  %v1132_v32 = vld [vmem:[%s4531_s3 + $0x628] sm:$0xff]  ;;  %v1182_v11 = vld [vmem:[%s4531_s3 + $0x7b8] sm:$0xff] }
  0x86   :  { %2534 = vmatpush3.bf16.msra.mxu1 %v2533_v49  ;;  %v690_v2 = vsel %vm351_vm2, %v687_v23, %v689_v25  ;;  %v484_v53 = vrot.slane %v483_v43, 4  ;;  %v491_v18 = vrot.slane %v490_v28, 4  ;;  %v540_v27 = vrot.slane %v539_v51, 4  ;;  %v1131_v49 = vld [vmem:[%s4531_s3 + $0x620] sm:$0xff] }
  0x87   :  { %1607 = vmatmul.mubr.f32.vlgmr.msra.gmra.mrb[4].mxu0 %v3919_v57  ;;  %v691_v44 = vsel %vm353_vm3, %v687_v23, %v690_v2  ;;  %2568 = vmatprep.subr.bf16.mxu1 %v2567_v30  ;;  %v471_v47 = vadd.f32 %v470_v12, %v469_v14  ;;  %v547_v13 = vrot.slane %v546_v52, 4  ;;  %v478_v37 = vadd.f32 %v477_v34, %v476_v48  ;;  %v1133_v30 = vld [vmem:[%s4531_s3 + $0x630] sm:$0xff]  ;;  %v1151_v14 = vld [vmem:[%s4531_s3 + $0x6c0] sm:$0xff] }
  0x88   :  { %2538 = vmatpush3.bf16.msra.mxu0 %v2537_v54  ;;  %v485_v59 = vadd.f32 %v484_v53, %v483_v43  ;;  %v492_v36 = vadd.f32 %v491_v18, %v490_v28  ;;  %v2571_v0 = vpack.c.bf16 %v4071_v46, %v4065_v35  ;;  %v2543_v56 = vpack.c.bf16 %v1148_v4, %v1147_v31  ;;  %v1149_v54 = vld [vmem:[%s4531_s3 + $0x6b0] sm:$0xff]  ;;  %v1135_v12 = vld [vmem:[%s4531_s3 + $0x640] sm:$0xff]  ;;  %v1154_v46 = vld [vmem:[%s4531_s3 + $0x6d8] sm:$0xff] }
  0x89   :  { %2540 = vmatprep.subr.bf16.mxu0 %v2539_v63  ;;  %v541_v33 = vadd.f32 %v540_v27, %v539_v51  ;;  %v548_v50 = vadd.f32 %v547_v13, %v546_v52  ;;  %v727_v62 = vmul.f32 0.0625, %v691_v44  ;;  %v2573_v8 = vpack.c.bf16 %v4089_v10, %v4084_v5  ;;  %v1153_v2 = vld [vmem:[%s4531_s3 + $0x6d0] sm:$0xff]  ;;  %v1163_v18 = vld [vmem:[%s4531_s3 + $0x720] sm:$0xff]  ;;  %v1164_v27 = vld [vmem:[%s4531_s3 + $0x728] sm:$0xff] }
  0x8a   :  { %v472_v6 = vrot.slane %v471_v47, 2  ;;  %v479_v1 = vrot.slane %v478_v37, 2  ;;  %v2545_v9 = vpack.c.bf16 %v1132_v32, %v1131_v49  ;;  %v486_v17 = vrot.slane %v485_v59, 2  ;;  %v1181_v13 = vld [vmem:[%s4531_s3 + $0x7b0] sm:$0xff] }
  0x8b   :  { %v493_v61 = vrot.slane %v492_v36, 2  ;;  %v553_v22 = vadd.f32 %v437_v20, %v427_v39  ;;  %v874_v40 = vcombine.low %v3919_v57, %v3946_v15  ;;  %v795_v19 = vrot.slane %v727_v62, %v2951_v26  ;;  %v1152_v57 = vld [vmem:[%s4531_s3 + $0x6c8] sm:$0xff] }
  0x8c   :  { %2542 = vmatpush3.bf16.msra.mxu0 %v2541_v16  ;;  %v2547_v60 = vpack.c.bf16 %v1150_v42, %v1149_v54  ;;  %v788_v38 = vcombine.high %v727_v62, %v727_v62  ;;  %v2549_v41 = vpack.c.bf16 %v1134_v24, %v1133_v30  ;;  %v428_v23 = vunpack.c.h.bf16 %v4047_v7  ;;  %v1179_v7 = vld [vmem:[%s4531_s3 + $0x7a0] sm:$0xff]  ;;  %v1180_v20 = vld [vmem:[%s4531_s3 + $0x7a8] sm:$0xff] }
  0x8d   :  { %2544 = vmatprep.subr.bf16.mxu0 %v2543_v56  ;;  %v542_v63 = vrot.slane %v541_v33, 2  ;;  %v549_v3 = vrot.slane %v548_v50, 2  ;;  %v803_v55 = vcombine.high %v795_v19, %v795_v19  ;;  %v473_v16 = vadd.f32 %v472_v6, %v471_v47  ;;  %v1138_v56 = vld [vmem:[%s4531_s3 + $0x658] sm:$0xff]  ;;  %v1155_v54 = vld [vmem:[%s4531_s3 + $0x6e0] sm:$0xff]  ;;  %v1156_v42 = vld [vmem:[%s4531_s3 + $0x6e8] sm:$0xff] }
  0x8e   :  { %v4124_v15 = vrot.slane %v788_v38, %v2951_v26  ;;  %v480_v39 = vadd.f32 %v479_v1, %v478_v37  ;;  %v438_v45 = vunpack.c.h.bf16 %v4052_v21  ;;  %v487_v48 = vadd.f32 %v486_v17, %v485_v59  ;;  %v1136_v21 = vld [vmem:[%s4531_s3 + $0x648] sm:$0xff]  ;;  %v1165_v17 = vld [vmem:[%s4531_s3 + $0x730] sm:$0xff] }
  0x8f   :  { %v494_v43 = vadd.f32 %v493_v61, %v492_v36  ;;  %v554_v28 = vrot.slane %v553_v22, 4  ;;  %v882_v25 = vrot.slane %v874_v40, %v2951_v26  ;;  %v875_v35 = vcombine.low %v795_v19, %v803_v55  ;;  %1676 = vmatprep.mubr.f32.mxu1 %v803_v55  ;;  %v1166_v61 = vld [vmem:[%s4531_s3 + $0x738] sm:$0xff] }
  0x90   :  { %2546 = vmatpush3.bf16.msra.mxu0 %v2545_v9  ;;  %v4139_v51 = vcombine.high %v4124_v15, %v4124_v15  ;;  %1677 = vmatmul.mubr.f32.vlgmr.msra.gmra.mrb[4].mxu1 %v795_v19  ;;  %v2551_v52 = vpack.c.bf16 %v1152_v57, %v1151_v14  ;;  %v543_v31 = vadd.f32 %v542_v63, %v541_v33  ;;  %v474_v44 = vrot.slane %v473_v16, 1  ;;  %v1184_v19 = vld [vmem:[%s4531_s3 + $0x7c8] sm:$0xff]  ;;  %v4203_v63 = vld [vmem:[%s4531_s3 + $0x740] sm:$0xff]  ;;  %v1158_v55 = vld [vmem:[%s4531_s3 + $0x6f8] sm:$0xff] }
  0x91   :  { %2548 = vmatprep.subr.bf16.mxu0 %v2547_v60  ;;  %v550_v4 = vadd.f32 %v549_v3, %v548_v50  ;;  %v889_v34 = vrot.slane %v875_v35, %v2951_v26  ;;  %2570 = vmatpush3.bf16.msra.mxu1 %v2569_v58  ;;  %v2575_v53 = vpack.c.bf16 %v1180_v20, %v1179_v7  ;;  %v481_v47 = vrot.slane %v480_v39, 1  ;;  %v1157_v3 = vld [vmem:[%s4531_s3 + $0x6f0] sm:$0xff]  ;;  %v385_v7 = vld [vmem:[%s4530_s2 + $0x20] sm:$0xff] }
  0x92   :  { %1746 = vmatprep.mubr.f32.mxu0 %v4139_v51  ;;  %2572 = vmatprep.subr.bf16.mxu1 %v2571_v0  ;;  %v488_v29 = vrot.slane %v487_v48, 1  ;;  %v495_v58 = vrot.slane %v494_v43, 1  ;;  %v555_v49 = vadd.f32 %v554_v28, %v553_v22  ;;  %v560_v32 = vadd.f32 %v438_v45, %v428_v23  ;;  %v1137_v0 = vld [vmem:[%s4531_s3 + $0x650] sm:$0xff]  ;;  %v1183_v22 = vld [vmem:[%s4531_s3 + $0x7c0] sm:$0xff]  ;;  %v1140_v23 = vld [vmem:[%s4531_s3 + $0x668] sm:$0xff] }
  0x93   :  { %v890_v37 = vcombine.low %v882_v25, %v889_v34  ;;  %v2553_v59 = vpack.c.bf16 %v1136_v21, %v1135_v12  ;;  %v2555_v36 = vpack.c.bf16 %v1154_v46, %v1153_v2  ;;  %v544_v33 = vrot.slane %v543_v31, 1  ;;  %v1168_v45 = vld [vmem:[%s4531_s3 + $0x748] sm:$0xff]  ;;  %v1186_v25 = vld [vmem:[%s4531_s3 + $0x7d8] sm:$0xff]  ;;  %v1141_v35 = vld [vmem:[%s4531_s3 + $0x670] sm:$0xff] }
  0x94   :  { %2550 = vmatpush3.bf16.msra.mxu0 %v2549_v41  ;;  %v551_v50 = vrot.slane %v550_v4, 1  ;;  %v556_v62 = vrot.slane %v555_v49, 2  ;;  %v561_v30 = vrot.slane %v560_v32, 4  ;;  %v2577_v24 = vpack.c.bf16 %v1164_v27, %v1163_v18  ;;  %v1139_v41 = vld [vmem:[%s4531_s3 + $0x660] sm:$0xff]  ;;  %v1142_v12 = vld [vmem:[%s4531_s3 + $0x678] sm:$0xff]  ;;  %v1208_v34 = vld [vmem:[%s4531_s3 + $0x888] sm:$0xff] }
  0x95   :  { %2552 = vmatprep.subr.bf16.mxu0 %v2551_v52  ;;  %932 = vst [vmem:[#allocation7 + $0x10] sm:$0xff] %v890_v37  ;;  %2574 = vmatpush3.bf16.msra.mxu1 %v2573_v8  ;;  %v2579_v6 = vpack.c.bf16 %v1182_v11, %v1181_v13  ;;  %v475_v1 = vadd.f32 %v474_v44, %v473_v16  ;;  %v395_v27 = vld [vmem:[%s4530_s2 + $0x70] sm:$0xff]  ;;  %v400_v13 = vld [vmem:[%s4530_s2 + $0x98] sm:$0xff] }
  0x96   :  { %v482_v9 = vadd.f32 %v481_v47, %v480_v39  ;;  %2576 = vmatprep.subr.bf16.mxu1 %v2575_v53  ;;  %v489_v40 = vadd.f32 %v488_v29, %v487_v48  ;;  %v496_v5 = vadd.f32 %v495_v58, %v494_v43  ;;  %v557_v10 = vadd.f32 %v556_v62, %v555_v49  ;;  %v1185_v48 = vld [vmem:[%s4531_s3 + $0x7d0] sm:$0xff]  ;;  %v390_v43 = vld [vmem:[%s4530_s2 + $0x48] sm:$0xff] }
  0x97   :  { %v562_v8 = vadd.f32 %v561_v30, %v560_v32  ;;  %v2557_v60 = vpack.c.bf16 %v1138_v56, %v1137_v0  ;;  %v2559_v38 = vpack.c.bf16 %v1156_v42, %v1155_v54  ;;  %v545_v14 = vadd.f32 %v544_v33, %v543_v31  ;;  %v1169_v37 = vld [vmem:[%s4531_s3 + $0x750] sm:$0xff]  ;;  %v1187_v42 = vld [vmem:[%s4531_s3 + $0x7e0] sm:$0xff]  ;;  %v1188_v33 = vld [vmem:[%s4531_s3 + $0x7e8] sm:$0xff] }
  0x98   :  { %2554 = vmatpush3.bf16.msra.mxu0 %v2553_v59  ;;  %v552_v57 = vadd.f32 %v551_v50, %v550_v4  ;;  %v558_v16 = vrot.slane %v557_v10, 1  ;;  %v2581_v20 = vpack.c.bf16 %v1166_v61, %v1165_v17  ;;  %v2583_v28 = vpack.c.bf16 %v1184_v19, %v1183_v22  ;;  %v1207_v4 = vld [vmem:[%s4531_s3 + $0x880] sm:$0xff]  ;;  %v1170_v59 = vld [vmem:[%s4531_s3 + $0x758] sm:$0xff]  ;;  %v1192_v17 = vld [vmem:[%s4531_s3 + $0x808] sm:$0xff] }
  0x99   :  { %2556 = vmatprep.subr.bf16.mxu0 %v2555_v36  ;;  %v563_v39 = vrot.slane %v562_v8, 2  ;;  %2578 = vmatpush3.bf16.msra.mxu1 %v2577_v24  ;;  %v618_v21 = vcombine.low %v475_v1, %v482_v9  ;;  %v619_v2 = vcombine.low %v489_v40, %v496_v5  ;;  %v2561_v46 = vpack.c.bf16 %v1140_v23, %v1139_v41  ;;  %v1191_v50 = vld [vmem:[%s4531_s3 + $0x800] sm:$0xff]  ;;  %v1209_v61 = vld [vmem:[%s4531_s3 + $0x890] sm:$0xff]  ;;  %v1210_v22 = vld [vmem:[%s4531_s3 + $0x898] sm:$0xff] }
  0x9a   :  { %2580 = vmatprep.subr.bf16.mxu1 %v2579_v6  ;;  %v2563_v31 = vpack.c.bf16 %v1158_v55, %v1157_v3  ;;  %v409_v53 = vunpack.c.l.bf16 %v385_v7  ;;  %v559_v18 = vadd.f32 %v558_v16, %v557_v10  ;;  %v660_v47 = vcombine.low %v545_v14, %v552_v57  ;;  %v1172_v41 = vld [vmem:[%s4531_s3 + $0x768] sm:$0xff]  ;;  %v1189_v55 = vld [vmem:[%s4531_s3 + $0x7f0] sm:$0xff]  ;;  %v1190_v14 = vld [vmem:[%s4531_s3 + $0x7f8] sm:$0xff] }
  0x9b   :  { %v564_v52 = vadd.f32 %v563_v39, %v562_v8  ;;  %v419_v11 = vunpack.c.l.bf16 %v390_v43  ;;  %v2585_v29 = vpack.c.bf16 %v1168_v45, %v4203_v63  ;;  %v2587_v58 = vpack.c.bf16 %v1186_v25, %v1185_v48  ;;  %v1193_v48 = vld [vmem:[%s4531_s3 + $0x810] sm:$0xff] }
  0x9c   :  { %2558 = vmatpush3.bf16.msra.mxu0 %v2557_v60  ;;  %v2565_v49 = vpack.c.bf16 %v1142_v12, %v1141_v35  ;;  %v410_v32 = vunpack.c.h.bf16 %v385_v7  ;;  %v2599_v36 = vpack.c.bf16 %v1208_v34, %v1207_v4  ;;  %v4252_v56 = vrot.slane %v618_v21, %v2951_v26  ;;  %v1211_v12 = vld [vmem:[%s4531_s3 + $0x8a0] sm:$0xff]  ;;  %v1174_v4 = vld [vmem:[%s4531_s3 + $0x778] sm:$0xff] }
  0x9d   :  { %2560 = vmatprep.subr.bf16.mxu0 %v2559_v38  ;;  %v565_v44 = vrot.slane %v564_v52, 1  ;;  %2582 = vmatpush3.bf16.msra.mxu1 %v2581_v20  ;;  %v4255_v54 = vrot.slane %v619_v2, %v2951_v26  ;;  %v420_v62 = vunpack.c.h.bf16 %v390_v43  ;;  %v429_v30 = vunpack.c.l.bf16 %v395_v27  ;;  %v1171_v38 = vld [vmem:[%s4531_s3 + $0x760] sm:$0xff]  ;;  %v1194_v43 = vld [vmem:[%s4531_s3 + $0x818] sm:$0xff] }
  0x9e   :  { %2584 = vmatprep.subr.bf16.mxu1 %v2583_v28  ;;  %v430_v24 = vunpack.c.h.bf16 %v395_v27  ;;  %v439_v6 = vunpack.c.l.bf16 %v400_v13  ;;  %v668_v9 = vrot.slane %v660_v47, %v2951_v26  ;;  %v440_v40 = vunpack.c.h.bf16 %v400_v13  ;;  %v1240_v47 = vld [vmem:[%s4531_s3 + $0x988] sm:$0xff] }
  0x9f   :  { %v566_v0 = vadd.f32 %v565_v44, %v564_v52  ;;  %v497_v5 = vadd.f32 %v419_v11, %v409_v53  ;;  %v2589_v10 = vpack.c.bf16 %v1170_v59, %v1169_v37  ;;  %v504_v8 = vadd.f32 %v420_v62, %v410_v32  ;;  %v1212_v52 = vld [vmem:[%s4531_s3 + $0x8a8] sm:$0xff]  ;;  %v1239_v44 = vld [vmem:[%s4531_s3 + $0x980] sm:$0xff] }
  0xa0   :  { %2562 = vmatpush3.bf16.msra.mxu0 %v2561_v46  ;;  %v567_v19 = vadd.f32 %v439_v6, %v429_v30  ;;  %v2591_v60 = vpack.c.bf16 %v1188_v33, %v1187_v42  ;;  %v574_v3 = vadd.f32 %v440_v40, %v430_v24  ;;  %v2601_v57 = vpack.c.bf16 %v1192_v17, %v1191_v50  ;;  %v1196_v32 = vld [vmem:[%s4531_s3 + $0x828] sm:$0xff]  ;;  %v1198_v40 = vld [vmem:[%s4531_s3 + $0x838] sm:$0xff] }
  0xa1   :  { %2564 = vmatprep.subr.bf16.mxu0 %v2563_v31  ;;  %v661_v1 = vcombine.low %v559_v18, %v566_v0  ;;  %2586 = vmatpush3.bf16.msra.mxu1 %v2585_v29  ;;  %v498_v63 = vrot.slane %v497_v5, 4  ;;  %v2603_v16 = vpack.c.bf16 %v1210_v22, %v1209_v61  ;;  %v505_v39 = vrot.slane %v504_v8, 4  ;;  %v1173_v31 = vld [vmem:[%s4531_s3 + $0x770] sm:$0xff] }
  0xa2   :  { %2588 = vmatprep.subr.bf16.mxu1 %v2587_v58  ;;  %v568_v7 = vrot.slane %v567_v19, 4  ;;  %v634_v20 = vcombine.low %v4252_v56, %v4255_v54  ;;  %v575_v25 = vrot.slane %v574_v3, 4  ;;  %v2593_v35 = vpack.c.bf16 %v1172_v41, %v1171_v38  ;;  %v1213_v56 = vld [vmem:[%s4531_s3 + $0x8b0] sm:$0xff]  ;;  %v1214_v54 = vld [vmem:[%s4531_s3 + $0x8b8] sm:$0xff] }
  0xa3   :  { %v675_v23 = vrot.slane %v661_v1, %v2951_v26  ;;  %v499_v28 = vadd.f32 %v498_v63, %v497_v5  ;;  %v506_v21 = vadd.f32 %v505_v39, %v504_v8  ;;  %v2595_v46 = vpack.c.bf16 %v1190_v14, %v1189_v55  ;;  %v1197_v22 = vld [vmem:[%s4531_s3 + $0x830] sm:$0xff]  ;;  %v1215_v8 = vld [vmem:[%s4531_s3 + $0x8c0] sm:$0xff]  ;;  %v1224_v63 = vld [vmem:[%s4531_s3 + $0x908] sm:$0xff] }
  0xa4   :  { %2566 = vmatpush3.bf16.msra.mxu0 %v2565_v49  ;;  %v569_v2 = vadd.f32 %v568_v7, %v567_v19  ;;  %v576_v18 = vadd.f32 %v575_v25, %v574_v3  ;;  %v2605_v27 = vpack.c.bf16 %v1194_v43, %v1193_v48  ;;  %v2607_v58 = vpack.c.bf16 %v1212_v52, %v1211_v12  ;;  %v1195_v49 = vld [vmem:[%s4531_s3 + $0x820] sm:$0xff]  ;;  %v1216_v19 = vld [vmem:[%s4531_s3 + $0x8c8] sm:$0xff]  ;;  %v1241_v14 = vld [vmem:[%s4531_s3 + $0x990] sm:$0xff] }
  0xa5   :  { %2600 = vmatprep.subr.bf16.mxu0 %v2599_v36  ;;  %v676_v45 = vcombine.low %v668_v9, %v675_v23  ;;  %2590 = vmatpush3.bf16.msra.mxu1 %v2589_v10  ;;  %v500_v53 = vrot.slane %v499_v28, 2  ;;  %v507_v13 = vrot.slane %v506_v21, 2  ;;  %v2597_v36 = vpack.c.bf16 %v1174_v4, %v1173_v31  ;;  %v1223_v23 = vld [vmem:[%s4531_s3 + $0x900] sm:$0xff]  ;;  %v1242_v7 = vld [vmem:[%s4531_s3 + $0x998] sm:$0xff]  ;;  %v1225_v31 = vld [vmem:[%s4531_s3 + $0x910] sm:$0xff] }
  0xa6   :  { %2592 = vmatprep.subr.bf16.mxu1 %v2591_v60  ;;  %v570_v11 = vrot.slane %v569_v2, 2  ;;  %v577_v59 = vrot.slane %v576_v18, 2  ;;  %v2631_v62 = vpack.c.bf16 %v1240_v47, %v1239_v44  ;;  %v2609_v1 = vpack.c.bf16 %v1196_v32, %v1195_v49  ;;  %v1218_v25 = vld [vmem:[%s4531_s3 + $0x8d8] sm:$0xff]  ;;  %v1244_v44 = vld [vmem:[%s4531_s3 + $0x9a8] sm:$0xff] }
  0xa7   :  { %1747 = vmatmul.mubr.f32.vlgmr.msra.gmra.mrb[6].mxu0 %v4124_v15  ;;  %v694_v34 = vrot.slane %v676_v45, 7  ;;  %v501_v37 = vadd.f32 %v500_v53, %v499_v28  ;;  %v508_v42 = vadd.f32 %v507_v13, %v506_v21  ;;  %v2611_v61 = vpack.c.bf16 %v1214_v54, %v1213_v56  ;;  %v1199_v45 = vld [vmem:[%s4531_s3 + $0x840] sm:$0xff]  ;;  %v1217_v28 = vld [vmem:[%s4531_s3 + $0x8d0] sm:$0xff]  ;;  %v1226_v4 = vld [vmem:[%s4531_s3 + $0x918] sm:$0xff] }
  0xa8   :  { %2602 = vmatpush3.bf16.msra.mxu0 %v2601_v57  ;;  %v571_v33 = vadd.f32 %v570_v11, %v569_v2  ;;  %v578_v24 = vadd.f32 %v577_v59, %v576_v18  ;;  %v891_v55 = vcombine.low %v4124_v15, %v4139_v51  ;;  %v2613_v57 = vpack.c.bf16 %v1198_v40, %v1197_v22  ;;  %v1200_v15 = vld [vmem:[%s4531_s3 + $0x848] sm:$0xff]  ;;  %v1202_v13 = vld [vmem:[%s4531_s3 + $0x858] sm:$0xff]  ;;  %v1227_v59 = vld [vmem:[%s4531_s3 + $0x920] sm:$0xff] }
  0xa9   :  { %v695_v29 = vsel %vm347_vm0, %v694_v34, %v634_v20  ;;  %2604 = vmatprep.subr.bf16.mxu0 %v2603_v16  ;;  %2594 = vmatpush3.bf16.msra.mxu1 %v2593_v35  ;;  %v502_v30 = vrot.slane %v501_v37, 1  ;;  %v509_v9 = vrot.slane %v508_v42, 1  ;;  %v2615_v20 = vpack.c.bf16 %v1216_v19, %v1215_v8  ;;  %v1220_v49 = vld [vmem:[%s4531_s3 + $0x8e8] sm:$0xff]  ;;  %v1245_v54 = vld [vmem:[%s4531_s3 + $0x9b0] sm:$0xff]  ;;  %v1230_v19 = vld [vmem:[%s4531_s3 + $0x938] sm:$0xff] }
  0xaa   :  { %v696_v0 = vsel %vm349_vm1, %v694_v34, %v695_v29  ;;  %2596 = vmatprep.subr.bf16.mxu1 %v2595_v46  ;;  %v572_v17 = vrot.slane %v571_v33, 1  ;;  %v579_v10 = vrot.slane %v578_v24, 1  ;;  %v2633_v43 = vpack.c.bf16 %v1224_v63, %v1223_v23  ;;  %v1228_v56 = vld [vmem:[%s4531_s3 + $0x928] sm:$0xff]  ;;  %v1229_v8 = vld [vmem:[%s4531_s3 + $0x930] sm:$0xff] }
  0xab   :  { %v697_v50 = vsel %vm351_vm2, %v694_v34, %v696_v0  ;;  %v503_v5 = vadd.f32 %v502_v30, %v501_v37  ;;  %v510_v60 = vadd.f32 %v509_v9, %v508_v42  ;;  %v899_v2 = vrot.slane %v891_v55, %v2951_v26  ;;  %v1246_v30 = vld [vmem:[%s4531_s3 + $0x9b8] sm:$0xff]  ;;  %v1205_v63 = vld [vmem:[%s4531_s3 + $0x870] sm:$0xff] }
  0xac   :  { %v698_v6 = vsel %vm353_vm3, %v694_v34, %v697_v50  ;;  %2606 = vmatpush3.bf16.msra.mxu0 %v2605_v27  ;;  %v573_v38 = vadd.f32 %v572_v17, %v571_v33  ;;  %v580_v3 = vadd.f32 %v579_v10, %v578_v24  ;;  %v2635_v46 = vpack.c.bf16 %v1242_v7, %v1241_v14  ;;  %v1243_v34 = vld [vmem:[%s4531_s3 + $0x9a0] sm:$0xff]  ;;  %v1201_v27 = vld [vmem:[%s4531_s3 + $0x850] sm:$0xff] }
  0xad   :  { %2608 = vmatprep.subr.bf16.mxu0 %v2607_v58  ;;  %2598 = vmatpush3.bf16.msra.mxu1 %v2597_v36  ;;  %v728_v41 = vmul.f32 0.0625, %v698_v6  ;;  %v635_v16 = vcombine.low %v503_v5, %v510_v60  ;;  %v2617_v53 = vpack.c.bf16 %v1200_v15, %v1199_v45  ;;  %v2619_v47 = vpack.c.bf16 %v1218_v25, %v1217_v28  ;;  %v1219_v58 = vld [vmem:[%s4531_s3 + $0x8e0] sm:$0xff]  ;;  %v1221_v17 = vld [vmem:[%s4531_s3 + $0x8f0] sm:$0xff]  ;;  %v1252_v25 = vld [vmem:[%s4531_s3 + $0x9e8] sm:$0xff] }
  0xae   :  { %2632 = vmatprep.subr.bf16.mxu1 %v2631_v62  ;;  %v677_v48 = vcombine.low %v573_v38, %v580_v3  ;;  %v2637_v37 = vpack.c.bf16 %v1226_v4, %v1225_v31  ;;  %v2639_v0 = vpack.c.bf16 %v1244_v44, %v1243_v34  ;;  %v2621_v42 = vpack.c.bf16 %v1202_v13, %v1201_v27  ;;  %v380_v33 = vld [vmem:[#allocation3 + $0x10] sm:$0xf]  ;;  %v1206_v3 = vld [vmem:[%s4531_s3 + $0x878] sm:$0xff]  ;;  %v1249_v7 = vld [vmem:[%s4531_s3 + $0x9d0] sm:$0xff] }
  0xaf   :  { %v812_v39 = vrot.slane %v728_v41, %v2951_v26  ;;  %v805_v51 = vcombine.high %v728_v41, %v728_v41  ;;  %v642_v52 = vrot.slane %v635_v16, %v2951_v26  ;;  %v2623_v24 = vpack.c.bf16 %v1220_v49, %v1219_v58  ;;  %v1203_v6 = vld [vmem:[%s4531_s3 + $0x860] sm:$0xff]  ;;  %v1248_v41 = vld [vmem:[%s4531_s3 + $0x9c8] sm:$0xff]  ;;  %v1253_v34 = vld [vmem:[%s4531_s3 + $0x9f0] sm:$0xff] }
  0xb0   :  { %2610 = vmatpush3.bf16.msra.mxu0 %v2609_v1  ;;  %v684_v21 = vrot.slane %v677_v48, %v2951_v26  ;;  %v1204_v1 = vld [vmem:[%s4531_s3 + $0x868] sm:$0xff]  ;;  %v2641_v40 = vpack.c.bf16 %v1228_v56, %v1227_v59  ;;  %v2643_v10 = vpack.c.bf16 %v1246_v30, %v1245_v54  ;;  %v1247_v60 = vld [vmem:[%s4531_s3 + $0x9c0] sm:$0xff]  ;;  %v2645_v55 = vpack.c.bf16 %v1230_v19, %v1229_v8  ;;  %v1234_v48 = vld [vmem:[%s4531_s3 + $0x958] sm:$0xff] }
  0xb1   :  { %2612 = vmatprep.subr.bf16.mxu0 %v2611_v61  ;;  %v820_v35 = vcombine.high %v812_v39, %v812_v39  ;;  %v4372_v12 = vrot.slane %v805_v51, %v2951_v26  ;;  %v1222_v61 = vld [vmem:[%s4531_s3 + $0x8f8] sm:$0xff]  ;;  %v2625_v38 = vpack.c.bf16 %v1204_v1, %v1203_v6  ;;  %v2647_v14 = vpack.c.bf16 %v1248_v41, %v1247_v60  ;;  %v1232_v16 = vld [vmem:[%s4531_s3 + $0x948] sm:$0xff]  ;;  %v1233_v51 = vld [vmem:[%s4531_s3 + $0x950] sm:$0xff] }
  0xb2   :  { %v701_v29 = vrot.slane %v684_v21, 7  ;;  %v2627_v23 = vpack.c.bf16 %v1222_v61, %v1221_v17  ;;  %v1251_v28 = vld [vmem:[%s4531_s3 + $0x9e0] sm:$0xff]  ;;  %v1236_v4 = vld [vmem:[%s4531_s3 + $0x968] sm:$0xff]  ;;  %v1237_v13 = vld [vmem:[%s4531_s3 + $0x970] sm:$0xff] }
  0xb3   :  { %v892_v18 = vcombine.low %v812_v39, %v820_v35  ;;  %1816 = vmatprep.mubr.f32.mxu1 %v820_v35  ;;  %v4397_v11 = vcombine.high %v4372_v12, %v4372_v12  ;;  %v1235_v31 = vld [vmem:[%s4531_s3 + $0x960] sm:$0xff] }
  0xb4   :  { %2614 = vmatpush3.bf16.msra.mxu0 %v2613_v57  ;;  %1817 = vmatmul.mubr.f32.vlgmr.msra.gmra.mrb[6].mxu1 %v812_v39  ;;  %v702_v36 = vsel %vm347_vm0, %v701_v29, %v642_v52  ;;  %v1231_v57 = vld [vmem:[%s4531_s3 + $0x940] sm:$0xff]  ;;  %v2629_v39 = vpack.c.bf16 %v1206_v3, %v1205_v63  ;;  %v2653_v52 = vpack.c.bf16 %v1234_v48, %v1233_v51 }
  0xb5   :  { %2616 = vmatprep.subr.bf16.mxu0 %v2615_v20  ;;  %v906_v32 = vrot.slane %v892_v18, %v2951_v26  ;;  %2634 = vmatpush3.bf16.msra.mxu1 %v2633_v43  ;;  %v703_v50 = vsel %vm349_vm1, %v701_v29, %v702_v36  ;;  %v1250_v20 = vld [vmem:[%s4531_s3 + $0x9d8] sm:$0xff]  ;;  %v2649_v45 = vpack.c.bf16 %v1232_v16, %v1231_v57 }
  0xb6   :  { %1886 = vmatprep.mubr.f32.mxu0 %v4397_v11  ;;  %2636 = vmatprep.subr.bf16.mxu1 %v2635_v46  ;;  %v704_v9 = vsel %vm351_vm2, %v701_v29, %v703_v50  ;;  %v2651_v15 = vpack.c.bf16 %v1250_v20, %v1249_v7  ;;  %v908_v21 = vcombine.low %v4372_v12, %v4397_v11  ;;  %v1238_v11 = vld [vmem:[%s4531_s3 + $0x978] sm:$0xff] }
  0xb7   :  { %v907_v62 = vcombine.low %v899_v2, %v906_v32  ;;  %v705_v22 = vsel %vm353_vm3, %v701_v29, %v704_v9  ;;  %v2655_v46 = vpack.c.bf16 %v1252_v25, %v1251_v28  ;;  %v2657_v18 = vpack.c.bf16 %v1236_v4, %v1235_v31 }
  0xb8   :  { %2618 = vmatpush3.bf16.msra.mxu0 %v2617_v53  ;;  %v711_v5 = vadd.f32 %v705_v22, %v380_v33  ;;  %v916_v44 = vrot.slane %v908_v21, %v2951_v26  ;;  %v2661_v58 = vpack.c.bf16 %v1238_v11, %v1237_v13 }
  0xb9   :  { %2620 = vmatprep.subr.bf16.mxu0 %v2619_v47  ;;  %933 = vst [vmem:[#allocation7 + $0x18] sm:$0xff] %v907_v62  ;;  %2638 = vmatpush3.bf16.msra.mxu1 %v2637_v37  ;;  %v1992_v37 = vld [vmem:[%s4532_s4] ss:$0 sm:$0xff] }
  0xba   :  { %2640 = vmatprep.subr.bf16.mxu1 %v2639_v0  ;;  %714 = vst [vmem:[#allocation3 + $0x10] sm:$0xf] %v711_v5 }
  0xbc   :  { %2622 = vmatpush3.bf16.msra.mxu0 %v2621_v42 }
  0xbd   :  { %2624 = vmatprep.subr.bf16.mxu0 %v2623_v24  ;;  %2642 = vmatpush3.bf16.msra.mxu1 %v2641_v40 }
  0xbe   :  { %2644 = vmatprep.subr.bf16.mxu1 %v2643_v10 }
  0xc0   :  { %2626 = vmatpush3.bf16.msra.mxu0 %v2625_v38 }
  0xc1   :  { %2628 = vmatprep.subr.bf16.mxu0 %v2627_v23  ;;  %2646 = vmatpush3.bf16.msra.mxu1 %v2645_v55  ;;  %v726_v43 = vld [vmem:[#allocation3 + $0x10] sm:$0xf] }
  0xc2   :  { %2648 = vmatprep.subr.bf16.mxu1 %v2647_v14  ;;  %v729_v35 = vmul.f32 0.0625, %v726_v43 }
  0xc4   :  { %2630 = vmatpush3.bf16.msra.mxu0 %v2629_v39  ;;  %v828_v2 = vrot.slane %v729_v35, %v2951_v26 }
  0xc5   :  { %2650 = vmatpush3.bf16.msra.mxu1 %v2649_v45 }
  0xc6   :  { %2652 = vmatprep.subr.bf16.mxu1 %v2651_v15  ;;  %v829_v53 = vcombine.high %v828_v2, %v828_v2 }
  0xc7   :  { %1887 = vmatmul.mubr.f32.vlgmr.msra.gmra.mrb[8].mxu0 %v4372_v12  ;;  %v1254_v12 = vld [vmem:[%s4531_s3 + $0x9f8] sm:$0xff]  ;;  %s2717_s3 = smov [#allocation7]  }
  0xc8   :  { %v909_v47 = vcombine.low %v828_v2, %v829_v53  ;;  %1956 = vmatprep.mubr.f32.mxu1 %v829_v53  ;;  %v2659_v27 = vpack.c.bf16 %v1254_v12, %v1253_v34  ;;  %s1980_s0 = sshll.u32 %s2717_s3, 4  ;;  %s1981_s0 = int_to_ptr.vmem [resolvable:$true] %s1980_s0 }
  0xc9   :  { %2654 = vmatpush3.bf16.msra.mxu1 %v2653_v52  ;;  %s2667_s21 = scalar_lea.vmem %s1981_s0, 640  ;;  %p2672_p1 = scmp.lt.s32.totalorder %s1981_s0, %s1981_s0 }
  0xca   :  { %2656 = vmatprep.subr.bf16.mxu1 %v2655_v46  ;;  %v923_v29 = vrot.slane %v909_v47, %v2951_v26  ;;  %p2668_p0 = scmp.ne.s32.totalorder %s1981_s0, %s2667_s21  ;;  %p2673_p2 = scmp.lt.s32.totalorder %s2667_s21, %s2667_s21 }
  0xcc   :  { %v924_v49 = vcombine.low %v916_v44, %v923_v29  ;;  %p2674_p3 = por %p2673_p2, %p2672_p1 }
  0xcd   :  { %2658 = vmatpush3.bf16.msra.mxu1 %v2657_v18 }
  0xce   :  { %2660 = vmatprep.subr.bf16.mxu1 %v2659_v27  ;;  %934 = vst [vmem:[#allocation7 + $0x20] sm:$0xff] %v924_v49  ;;  %p2675_p4 = pnand %p2674_p3, %p2668_p0 }
  0xd1   :  { %2662 = vmatpush3.bf16.msra.mxu1 %v2661_v58 }
  0xd4   :  { %1957 = vmatmul.mubr.f32.vlgmr.msra.gmra.mrb[8].mxu1 %v828_v2 }
 0x111   :  { %v2025_v32 = vpop.f32.mrb[0].mxu0 }
 0x112   :  { %v2026_v59 = vpop.f32.mrb[1].mxu0 }
 0x113   :  { %v2027_v36 = vadd.f32 %v2026_v59, %v2025_v32  ;;  %v2060_v0 = vpop.f32.mrb[0].mxu1 }
 0x114   :  { %v2061_v56 = vpop.f32.mrb[1].mxu1 }
 0x115   :  { %v1329_v54 = vadd.f32 %v2027_v36, %v1992_v37  ;;  %v2062_v42 = vadd.f32 %v2061_v56, %v2060_v0 }
 0x117   :  { %v1399_v33 = vadd.f32 %v2062_v42, %v1329_v54 }
 0x118   :  { %2678 = shalt.err (!%p2675_p4)
}
 0x119   :  { %s2679_s4 = scalar_lea.hbm %s4534_s6, 640 }
 0x11a   :  { %p2680_p5 = scmp.ne.s32.totalorder %s4534_s6, %s2679_s4  ;;  %p2683_p6 = scmp.lt.u32.totalorder %s2679_s4, %s4534_s6 }
 0x11c   :  { %p2685_p7 = pnand %p2683_p6, %p2680_p5 }
 0x11e   :  { %2688 = shalt.err (!%p2685_p7)
}
 0x11f   :  { %1983 = dma.vmem_to_hbm [thread:$0]  %s1981_s0, 640, %s4534_s6, [#allocation8]   ;;  %vm1962_vm4 = vcmask 123904  }
 0x120   :  { %s2718_s6 = smov [#allocation5]  }
 0x121   :  { %s1970_s30 = sshll.u32 %s2718_s6, 4  ;;  %s1971_s30 = int_to_ptr.vmem [resolvable:$true] %s1970_s30 }
 0x122   :  { %s2689_s7 = scalar_lea.vmem %s1971_s30, 32  ;;  %p2694_p9 = scmp.lt.s32.totalorder %s1971_s30, %s1971_s30 }
 0x123   :  { %p2690_p8 = scmp.ne.s32.totalorder %s1971_s30, %s2689_s7  ;;  %p2695_p10 = scmp.lt.s32.totalorder %s2689_s7, %s2689_s7 }
 0x125   :  { %p2696_p11 = por %p2695_p10, %p2694_p9 }
 0x127   :  { %p2697_p12 = pnand %p2696_p11, %p2690_p8 }
 0x138   :  { %v2095_v26 = vpop.f32.mrb[2].mxu0 }
 0x139   :  { %v2096_v50 = vpop.f32.mrb[3].mxu0 }
 0x13a   :  { %v2097_v62 = vadd.f32 %v2096_v50, %v2095_v26  ;;  %v2130_v30 = vpop.f32.mrb[2].mxu1 }
 0x13b   :  { %v2131_v24 = vpop.f32.mrb[3].mxu1 }
 0x13c   :  { %v1469_v6 = vadd.f32 %v2097_v62, %v1399_v33  ;;  %v2132_v1 = vadd.f32 %v2131_v24, %v2130_v30 }
 0x13e   :  { %v1539_v9 = vadd.f32 %v2132_v1, %v1469_v6 }
 0x15a   :  { %v2165_v17 = vpop.f32.mrb[4].mxu0 }
 0x15b   :  { %v2166_v61 = vpop.f32.mrb[5].mxu0 }
 0x15c   :  { %v2167_v22 = vadd.f32 %v2166_v61, %v2165_v17 }
 0x15e   :  { %v1609_v40 = vadd.f32 %v2167_v22, %v1539_v9 }
 0x163   :  { %v2200_v5 = vpop.f32.mrb[4].mxu1 }
 0x164   :  { %v2201_v10 = vpop.f32.mrb[5].mxu1 }
 0x165   :  { %v2202_v8 = vadd.f32 %v2201_v10, %v2200_v5 }
 0x167   :  { %v1679_v19 = vadd.f32 %v2202_v8, %v1609_v40 }
 0x17a   :  { %v2235_v60 = vpop.f32.mrb[6].mxu0 }
 0x17b   :  { %v2236_v38 = vpop.f32.mrb[7].mxu0 }
 0x17c   :  { %v2237_v41 = vadd.f32 %v2236_v38, %v2235_v60 }
 0x17e   :  { %v1749_v23 = vadd.f32 %v2237_v41, %v1679_v19 }
 0x187   :  { %v2270_v63 = vpop.f32.mrb[6].mxu1 }
 0x188   :  { %v2271_v3 = vpop.f32.mrb[7].mxu1 }
 0x189   :  { %v2272_v55 = vadd.f32 %v2271_v3, %v2270_v63 }
 0x18b   :  { %v1819_v14 = vadd.f32 %v2272_v55, %v1749_v23 }
 0x19a   :  { %v2305_v57 = vpop.f32.mrb[8].mxu0 }
 0x19b   :  { %v2306_v16 = vpop.f32.mrb[9].mxu0 }
 0x19c   :  { %v2307_v39 = vadd.f32 %v2306_v16, %v2305_v57 }
 0x19e   :  { %v1889_v7 = vadd.f32 %v2307_v39, %v1819_v14 }
 0x1a7   :  { %v2340_v20 = vpop.f32.mrb[8].mxu1 }
 0x1a8   :  { %v2341_v45 = vpop.f32.mrb[9].mxu1 }
 0x1a9   :  { %v2342_v15 = vadd.f32 %v2341_v45, %v2340_v20 }
 0x1ab   :  { %v1959_v51 = vadd.f32 %v2342_v15, %v1889_v7 }
 0x1ad   :  { %1963 = vst.msk [vmem:[#allocation5] sm:$0x3] %vm1962_vm4, %v1959_v51 }
 0x1ae   :  { %2700 = shalt.err (!%p2697_p12)
}
 0x1af   :  { %s2701_s10 = scalar_lea.hbm %s4533_s5, 32 }
 0x1b0   :  { %p2702_p13 = scmp.ne.s32.totalorder %s4533_s5, %s2701_s10  ;;  %p2705_p0 = scmp.lt.u32.totalorder %s2701_s10, %s4533_s5 }
 0x1b2   :  { %p2707_p1 = pnand %p2705_p0, %p2702_p13 }
 0x1b4   :  { %2710 = shalt.err (!%p2707_p1)
}
 0x1b5   :  { %1973 = dma.vmem_to_hbm [thread:$0]  %s1971_s30, 32, %s4533_s5, [#allocation6]  }
 0x1b6   :  { %2711 = dma.done.wait [#allocation6], 32  }
 0x1b7   :  { %2712 = vsyncadd [#allocation6], 4294967264 }
 0x1b8   :  { %2713 = dma.done.wait [#allocation8], 640  }
 0x1b9   :  { %2714 = vsyncadd [#allocation8], 4294966656 }
 0x1ba   :  { %1990 = vsyncpa [#allocation6], 1 }
 0x1bb   :  { %1991 = vsyncpa [#allocation8], 1 }

</bundles_post_ra>
